<compile_context>
chip_gen: v6e
topology: v6e:2x2x1
jax: 0.10.0
libtpu: 0.0.40
codegen_flags: <defaults>
</compile_context>

<pallas_src>
import jax
import jax.numpy as jnp
from jax.experimental import pallas as pl
from jax.experimental.pallas import tpu as pltpu

C_IN = 2048   # Linear(2048, nattr) input dim, fixed by the module
BN_EPS = 1e-5


def _head_kernel(feat_ref, w_ref, b_ref, out_ref, acc_ref):
    # feat_ref: (TN, TC, HW)   w_ref: (TC, A_pad)   b_ref: (1, A_pad)
    # out_ref:  (TN, A_pad)    acc_ref: (TN, A_pad) f32 scratch
    k = pl.program_id(1)

    @pl.when(k == 0)
    def _init():
        acc_ref[...] = jnp.zeros_like(acc_ref)

    # Partial global-average pool: plain sum over the spatial (lane) axis for
    # this channel tile (the 1/HW scale is pre-folded into the weight).
    # Per-tile upcast keeps bf16 inputs correct everywhere (incl. v5e VPU).
    pooled = jnp.sum(feat_ref[...].astype(jnp.float32), axis=-1)        # (TN, TC)

    # Partial Linear (+ folded BN) on the MXU, accumulated in f32.
    acc_ref[...] += jnp.dot(pooled, w_ref[...],
                            preferred_element_type=jnp.float32)

    @pl.when(k == pl.num_programs(1) - 1)
    def _finalize():
        out_ref[...] = (acc_ref[...] + b_ref[...]).astype(out_ref.dtype)


def base_classifier_forward(feature_nchw, params, *, tile_c=512):
    """feature_nchw: (N, 2048, H, W) float32/bfloat16. Returns (N, nattr) f32 logits."""
    n, c, h, w = feature_nchw.shape
    assert c == C_IN
    hw = h * w
    nattr = params["w"].shape[1]

    # Zero-cost view of the contiguous NCHW tensor: (N, C, H, W) -> (N, C, H*W).
    feat = feature_nchw.reshape(n, c, hw)

    # Fold inference BatchNorm1d and the 1/HW pooling scale into the Linear.
    scale = (params["gamma"].astype(jnp.float32) *
             jax.lax.rsqrt(params["running_var"].astype(jnp.float32) + BN_EPS))
    w_folded = params["w"].astype(jnp.float32) * scale / hw             # (C, A)
    b_folded = ((params["b"] - params["running_mean"]) * scale
                + params["beta"]).astype(jnp.float32)                   # (A,)

    # Pad the attribute axis to a lane-dense multiple of 128.
    a_pad = ((nattr + 127) // 128) * 128
    w_p = jnp.zeros((c, a_pad), jnp.float32).at[:, :nattr].set(w_folded)
    b_p = jnp.zeros((1, a_pad), jnp.float32).at[0, :nattr].set(b_folded)

    # Tile sizes. Channel tiles of 512 keep each double-buffered feature block
    # small (a few MiB even with lane padding) on every TPU generation.
    tc = tile_c if c % tile_c == 0 else c
    if n <= 8 or n % 8:
        tn = n          # whole (small / odd) batch in one block
    else:
        tn = 8          # multiple N blocks -> megacore sharding on v7x

    grid = (n // tn, c // tc)

    out = pl.pallas_call(
        _head_kernel,
        out_shape=jax.ShapeDtypeStruct((n, a_pad), jnp.float32),
        grid_spec=pltpu.PrefetchScalarGridSpec(
            num_scalar_prefetch=0,
            grid=grid,
            in_specs=[
                pl.BlockSpec((tn, tc, hw), lambda i, k: (i, k, 0)),   # feature
                pl.BlockSpec((tc, a_pad), lambda i, k: (k, 0)),       # folded W
                pl.BlockSpec((1, a_pad), lambda i, k: (0, 0)),        # folded b
            ],
            out_specs=pl.BlockSpec((tn, a_pad), lambda i, k: (i, 0)),
            scratch_shapes=[pltpu.VMEM((tn, a_pad), jnp.float32)],
        ),
        compiler_params=pltpu.CompilerParams(
            dimension_semantics=("parallel", "arbitrary"),
            vmem_limit_bytes=32 << 20,   # safe on v7x (64 MiB physical VMEM)
        ),
    )(feat, w_p, b_p)

    return out[:, :nattr]


def make_params(key, nattr):
    k_w, k_b, k_g, k_be, k_m, k_v = jax.random.split(key, 6)
    return {
        "w": jax.random.normal(k_w, (C_IN, nattr), jnp.float32) * 0.02,
        "b": jax.random.normal(k_b, (nattr,), jnp.float32) * 0.01,
        "gamma": 1.0 + 0.1 * jax.random.normal(k_g, (nattr,), jnp.float32),
        "beta": 0.1 * jax.random.normal(k_be, (nattr,), jnp.float32),
        "running_mean": 0.1 * jax.random.normal(k_m, (nattr,), jnp.float32),
        "running_var": 1.0 + 0.1 * jax.random.uniform(k_v, (nattr,), jnp.float32),
    }


def _reference(feature_nchw, params):
    pooled = jnp.mean(feature_nchw, axis=(2, 3))                        # (N, C)
    x = pooled @ params["w"] + params["b"]
    return ((x - params["running_mean"])
            * jax.lax.rsqrt(params["running_var"] + BN_EPS)
            * params["gamma"] + params["beta"])


if __name__ == "__main__":
    key = jax.random.PRNGKey(0)
    k_feat, k_par = jax.random.split(key)

    N, H, W, NATTR = 2, 4, 4, 32                  # small: batch=2, spatial=16
    feature = jax.random.normal(k_feat, (N, C_IN, H, W), jnp.float32)
    params = make_params(k_par, NATTR)

    out = jax.block_until_ready(base_classifier_forward(feature, params))
    ref = _reference(feature, params)

    assert out.shape == (N, NATTR)
    assert jnp.allclose(out, ref, atol=1e-4, rtol=1e-4), \
        float(jnp.max(jnp.abs(out - ref)))
    print("KERNEL_OK")
</pallas_src>

<mosaic_0001>
module attributes {stable_mosaic.version = 11 : i64} {
  func.func @_head_kernel(%arg0: i32, %arg1: i32, %arg2: memref<2x512x16xf32, #tpu.memory_space<vmem>>, %arg3: memref<512x128xf32, #tpu.memory_space<vmem>>, %arg4: memref<1x128xf32, #tpu.memory_space<vmem>>, %arg5: memref<2x128xf32, #tpu.memory_space<vmem>>, %arg6: memref<2x128xf32, #tpu.memory_space<vmem>>) attributes {dimension_semantics = [#tpu.dimension_semantics<parallel>, #tpu.dimension_semantics<arbitrary>], iteration_bounds = array<i64: 1, 4>, scalar_prefetch = 0 : i64, scratch_operands = 1 : i64, tpu.core_type = #tpu.core_type<tc>, window_params = [{transform_indices = @transform_0, window_bounds = array<i64: 2, 512, 16>}, {transform_indices = @transform_1, window_bounds = array<i64: 512, 128>}, {pipeline_mode = #tpu.pipeline_mode<synchronous>, transform_indices = @transform_2, window_bounds = array<i64: 1, 128>}, {transform_indices = @transform_3, window_bounds = array<i64: 2, 128>}]} {
    %c0_i32 = arith.constant 0 : i32
    %0 = arith.cmpi eq, %arg1, %c0_i32 : i32
    %1 = arith.extui %0 : i1 to i32
    %c0_i32_0 = arith.constant 0 : i32
    %2 = arith.cmpi ne, %1, %c0_i32_0 : i32
    scf.if %2 {
      %cst_11 = arith.constant 0.000000e+00 : f32
      %13 = vector.broadcast %cst_11 : f32 to vector<2x128xf32>
      %c0_12 = arith.constant 0 : index
      %c0_13 = arith.constant 0 : index
      %14 = vector.load %arg6[%c0_12, %c0_13] : memref<2x128xf32, #tpu.memory_space<vmem>>, vector<2x128xf32>
      tpu.vector_store %arg6[%c0_12, %c0_13], %13 {strides = array<i32>} : memref<2x128xf32, #tpu.memory_space<vmem>>, vector<2x128xf32>,
    } else {
    }
    %c0 = arith.constant 0 : index
    %c0_1 = arith.constant 0 : index
    %c0_2 = arith.constant 0 : index
    %3 = vector.load %arg2[%c0, %c0_1, %c0_2] : memref<2x512x16xf32, #tpu.memory_space<vmem>>, vector<2x512x16xf32>
    %cst = arith.constant dense<0.000000e+00> : vector<2x512xf32>
    %4 = vector.multi_reduction <add>, %3, %cst [2] : vector<2x512x16xf32> to vector<2x512xf32>
    %c0_3 = arith.constant 0 : index
    %c0_4 = arith.constant 0 : index
    %5 = vector.load %arg6[%c0_3, %c0_4] : memref<2x128xf32, #tpu.memory_space<vmem>>, vector<2x128xf32>
    %c0_5 = arith.constant 0 : index
    %c0_6 = arith.constant 0 : index
    %6 = vector.load %arg3[%c0_5, %c0_6] : memref<512x128xf32, #tpu.memory_space<vmem>>, vector<512x128xf32>
    %cst_7 = arith.constant dense<0.000000e+00> : vector<2x128xf32>
    %7 = tpu.matmul %4, %6, %cst_7 {dimension_numbers = #tpu.dot_dimension_numbers<[1], [0], [0], [1], [0, 0, 1, 1], [], []>} : vector<2x512xf32>, vector<512x128xf32>, vector<2x128xf32> -> vector<2x128xf32>
    %8 = arith.addf %5, %7 : vector<2x128xf32>
    %c0_8 = arith.constant 0 : index
    %c0_9 = arith.constant 0 : index
    %9 = vector.load %arg6[%c0_8, %c0_9] : memref<2x128xf32, #tpu.memory_space<vmem>>, vector<2x128xf32>
    tpu.vector_store %arg6[%c0_8, %c0_9], %8 {strides = array<i32>} : memref<2x128xf32, #tpu.memory_space<vmem>>, vector<2x128xf32>,
    %c3_i32 = arith.constant 3 : i32
    %10 = arith.cmpi eq, %arg1, %c3_i32 : i32
    %11 = arith.extui %10 : i1 to i32
    %c0_i32_10 = arith.constant 0 : i32
    %12 = arith.cmpi ne, %11, %c0_i32_10 : i32
    scf.if %12 {
      %c0_11 = arith.constant 0 : index
      %c0_12 = arith.constant 0 : index
      %13 = vector.load %arg6[%c0_11, %c0_12] : memref<2x128xf32, #tpu.memory_space<vmem>>, vector<2x128xf32>
      %c0_13 = arith.constant 0 : index
      %c0_14 = arith.constant 0 : index
      %14 = vector.load %arg4[%c0_13, %c0_14] : memref<1x128xf32, #tpu.memory_space<vmem>>, vector<1x128xf32>
      %15 = vector.broadcast %14 : vector<1x128xf32> to vector<2x128xf32>
      %16 = arith.addf %13, %15 : vector<2x128xf32>
      %c0_15 = arith.constant 0 : index
      %c0_16 = arith.constant 0 : index
      %17 = vector.load %arg5[%c0_15, %c0_16] : memref<2x128xf32, #tpu.memory_space<vmem>>, vector<2x128xf32>
      tpu.vector_store %arg5[%c0_15, %c0_16], %16 {strides = array<i32>} : memref<2x128xf32, #tpu.memory_space<vmem>>, vector<2x128xf32>,
    } else {
    }
    return
  }
  func.func @transform_0(%arg0: i32, %arg1: i32) -> (i32, i32, i32) {
    %c0_i32 = arith.constant 0 : i32
    %c0_i32_0 = arith.constant 0 : i32
    return %arg0, %arg1, %c0_i32 : i32, i32, i32
  }
  func.func @transform_1(%arg0: i32, %arg1: i32) -> (i32, i32) {
    %c0_i32 = arith.constant 0 : i32
    %c0_i32_0 = arith.constant 0 : i32
    return %arg1, %c0_i32 : i32, i32
  }
  func.func @transform_2(%arg0: i32, %arg1: i32) -> (i32, i32) {
    %c0_i32 = arith.constant 0 : i32
    %c0_i32_0 = arith.constant 0 : i32
    %c0_i32_1 = arith.constant 0 : i32
    return %c0_i32, %c0_i32_0 : i32, i32
  }
  func.func @transform_3(%arg0: i32, %arg1: i32) -> (i32, i32) {
    %c0_i32 = arith.constant 0 : i32
    %c0_i32_0 = arith.constant 0 : i32
    return %arg0, %c0_i32 : i32, i32
  }
}

</mosaic_0001>

<bundles_post_ra>
// kernel: tpu_custom_call.1
= control target key start
LH: loop header
LB: loop body
LE: loop exit
PB: predicated region body
PF: predicated region fallthrough
CT: control target
= control target key end

     0   :  { %8 = vsyncpa [#allocation5], 0  ;;  %s2593_s12 = smov 0   ;;  %s2595_s13 = smov 0   ;;  %s3724_s0 = inlined_call_operand.vmem [shape: f32[2,2048,16], index: 0, kind: input, shape index: {}]   ;;  %s3725_s1 = inlined_call_operand.vmem [shape: f32[2048,128], index: 1, kind: input, shape index: {}]   ;;  %s3726_s2 = inlined_call_operand.vmem [shape: f32[1,128], index: 2, kind: input, shape index: {}]   ;;  %s3727_s3 = inlined_call_operand.hbm [shape: f32[2,128], index: 3, kind: output, shape index: {}]  }
   0x1   :  { %s2597_s14 = smov 0   ;;  %s2599_s15 = smov 0  }
   0x2   :  { %s2601_s16 = smov 0  }
   0x3 LB: > { %s2367_s17 = sadd.s32 4294967295, %s2569_s16   ;;  %s23_s18 = sadd.s32 1, %s2565_s15  ;;  %s2569_s16 = sphi %s2601_s16, %s14_s16   ;;  %s2565_s15 = sphi %s2599_s15, %s3732_s15   ;;  %s2561_s14 = sphi %s2597_s14, %s3731_s14   ;;  %s2557_s13 = sphi %s2595_s13, %s3730_s13   ;;  %s2553_s12 = sphi %s2593_s12, %s3729_s12  }
   0x4   : > { %p24_p0 = scmp.ge.s32.totalorder %s23_s18, 4  ;;  %p42_p1 = scmp.ne.s32.totalorder %s2557_s13, %s2553_s12 }
   0x5   : > { %p43_p2 = scmp.eq.s32.totalorder %s2569_s16, 0  ;;  %s35_s20 = sadd.s32 1, %s2557_s13 }
   0x6   : > { %s3734_s18 = smov (%p24_p0, %s23_s18), 0  ;;  %p2369_p5 = scmp.ge.s32.totalorder %s2569_s16, 4 }
   0x7   : > { %p44_p3 = por %p43_p2, %p42_p1  ;;  %s31_s19 = ssub.s32 %s2565_s15, %s3734_s18 }
   0x8   : > { %p33_p4 = scmp.eq.s32.totalorder %s31_s19, 0  ;;  %144 = sbr.rel (%p2369_p5) target bundleno = 81 (0x51), region = 20 }
   0xa   : > { %s2629_s21 = scalar_select %p33_p4, %s2557_s13, %s35_s20  }
   0xd   : > { %147 = sbr.rel (!%p44_p3) target bundleno = 81 (0x51), region = 24  ;;  %s149_s22 = sand.u32 (%p44_p3), 1, %s2557_s13  }
   0xe   : > { %s2384_s23 = sshll.u32 (%p44_p3), %s2565_s15, 9  ;;  %s2370_s24 = sshll.u32 (%p44_p3), %s149_s22, 10 }
   0xf   : > { %s2637_s27 = scalar_lea.vmem (%p44_p3), %s3724_s0, %s2384_s23  ;;  %s2642_s28 = scalar_lea.vmem (%p44_p3), [#allocation3], %s2370_s24 }
  0x10   : > { %v440_v0 = vld [vmem:[%s2637_s27] sm:$0xff] (%p44_p3)  ;;  %v442_v1 = vld [vmem:[%s2637_s27 + $0x8] sm:$0xff] (%p44_p3)  ;;  %v444_v2 = vld [vmem:[%s2637_s27 + $0x10] sm:$0xff] (%p44_p3) }
  0x11   : > { %441 = vst [vmem:[%s2642_s28] sm:$0xff] (%p44_p3), %v440_v0  ;;  %443 = vst [vmem:[%s2642_s28 + $0x8] sm:$0xff] (%p44_p3), %v442_v1  ;;  %v446_v3 = vld [vmem:[%s2637_s27 + $0x18] sm:$0xff] (%p44_p3)  ;;  %v448_v4 = vld [vmem:[%s2637_s27 + $0x20] sm:$0xff] (%p44_p3) }
  0x12   : > { %445 = vst [vmem:[%s2642_s28 + $0x10] sm:$0xff] %v444_v2  ;;  %v450_v5 = vld [vmem:[%s2637_s27 + $0x28] sm:$0xff]  ;;  %447 = vst [vmem:[%s2642_s28 + $0x18] sm:$0xff] %v446_v3  ;;  %v452_v6 = vld [vmem:[%s2637_s27 + $0x30] sm:$0xff] }
  0x13   : > { %449 = vst [vmem:[%s2642_s28 + $0x20] sm:$0xff] %v448_v4  ;;  %451 = vst [vmem:[%s2642_s28 + $0x28] sm:$0xff] %v450_v5  ;;  %v454_v7 = vld [vmem:[%s2637_s27 + $0x38] sm:$0xff]  ;;  %v456_v8 = vld [vmem:[%s2637_s27 + $0x40] sm:$0xff] }
  0x14   : > { %453 = vst [vmem:[%s2642_s28 + $0x30] sm:$0xff] %v452_v6  ;;  %455 = vst [vmem:[%s2642_s28 + $0x38] sm:$0xff] %v454_v7  ;;  %v458_v9 = vld [vmem:[%s2637_s27 + $0x48] sm:$0xff]  ;;  %v460_v10 = vld [vmem:[%s2637_s27 + $0x50] sm:$0xff] }
  0x15   : > { %457 = vst [vmem:[%s2642_s28 + $0x40] sm:$0xff] %v456_v8  ;;  %v462_v11 = vld [vmem:[%s2637_s27 + $0x58] sm:$0xff]  ;;  %459 = vst [vmem:[%s2642_s28 + $0x48] sm:$0xff] %v458_v9  ;;  %v464_v12 = vld [vmem:[%s2637_s27 + $0x60] sm:$0xff] }
  0x16   : > { %461 = vst [vmem:[%s2642_s28 + $0x50] sm:$0xff] %v460_v10  ;;  %463 = vst [vmem:[%s2642_s28 + $0x58] sm:$0xff] %v462_v11  ;;  %v466_v13 = vld [vmem:[%s2637_s27 + $0x68] sm:$0xff]  ;;  %v468_v14 = vld [vmem:[%s2637_s27 + $0x70] sm:$0xff] }
  0x17   : > { %465 = vst [vmem:[%s2642_s28 + $0x60] sm:$0xff] %v464_v12  ;;  %467 = vst [vmem:[%s2642_s28 + $0x68] sm:$0xff] %v466_v13  ;;  %v470_v15 = vld [vmem:[%s2637_s27 + $0x78] sm:$0xff]  ;;  %v472_v16 = vld [vmem:[%s2637_s27 + $0x80] sm:$0xff] }
  0x18   : > { %469 = vst [vmem:[%s2642_s28 + $0x70] sm:$0xff] %v468_v14  ;;  %v474_v17 = vld [vmem:[%s2637_s27 + $0x88] sm:$0xff]  ;;  %471 = vst [vmem:[%s2642_s28 + $0x78] sm:$0xff] %v470_v15  ;;  %v476_v18 = vld [vmem:[%s2637_s27 + $0x90] sm:$0xff] }
  0x19   : > { %473 = vst [vmem:[%s2642_s28 + $0x80] sm:$0xff] %v472_v16  ;;  %475 = vst [vmem:[%s2642_s28 + $0x88] sm:$0xff] %v474_v17  ;;  %v478_v19 = vld [vmem:[%s2637_s27 + $0x98] sm:$0xff]  ;;  %v480_v20 = vld [vmem:[%s2637_s27 + $0xa0] sm:$0xff] }
  0x1a   : > { %477 = vst [vmem:[%s2642_s28 + $0x90] sm:$0xff] %v476_v18  ;;  %479 = vst [vmem:[%s2642_s28 + $0x98] sm:$0xff] %v478_v19  ;;  %v482_v21 = vld [vmem:[%s2637_s27 + $0xa8] sm:$0xff]  ;;  %v484_v22 = vld [vmem:[%s2637_s27 + $0xb0] sm:$0xff] }
  0x1b   : > { %481 = vst [vmem:[%s2642_s28 + $0xa0] sm:$0xff] %v480_v20  ;;  %v486_v23 = vld [vmem:[%s2637_s27 + $0xb8] sm:$0xff]  ;;  %483 = vst [vmem:[%s2642_s28 + $0xa8] sm:$0xff] %v482_v21  ;;  %v488_v24 = vld [vmem:[%s2637_s27 + $0xc0] sm:$0xff] }
  0x1c   : > { %485 = vst [vmem:[%s2642_s28 + $0xb0] sm:$0xff] %v484_v22  ;;  %487 = vst [vmem:[%s2642_s28 + $0xb8] sm:$0xff] %v486_v23  ;;  %v490_v25 = vld [vmem:[%s2637_s27 + $0xc8] sm:$0xff]  ;;  %v492_v26 = vld [vmem:[%s2637_s27 + $0xd0] sm:$0xff] }
  0x1d   : > { %489 = vst [vmem:[%s2642_s28 + $0xc0] sm:$0xff] %v488_v24  ;;  %491 = vst [vmem:[%s2642_s28 + $0xc8] sm:$0xff] %v490_v25  ;;  %v494_v27 = vld [vmem:[%s2637_s27 + $0xd8] sm:$0xff]  ;;  %v496_v28 = vld [vmem:[%s2637_s27 + $0xe0] sm:$0xff] }
  0x1e   : > { %493 = vst [vmem:[%s2642_s28 + $0xd0] sm:$0xff] %v492_v26  ;;  %v498_v29 = vld [vmem:[%s2637_s27 + $0xe8] sm:$0xff]  ;;  %495 = vst [vmem:[%s2642_s28 + $0xd8] sm:$0xff] %v494_v27  ;;  %v500_v30 = vld [vmem:[%s2637_s27 + $0xf0] sm:$0xff] }
  0x1f   : > { %497 = vst [vmem:[%s2642_s28 + $0xe0] sm:$0xff] %v496_v28  ;;  %499 = vst [vmem:[%s2642_s28 + $0xe8] sm:$0xff] %v498_v29  ;;  %v502_v31 = vld [vmem:[%s2637_s27 + $0xf8] sm:$0xff]  ;;  %v504_v32 = vld [vmem:[%s2637_s27 + $0x100] sm:$0xff] }
  0x20   : > { %501 = vst [vmem:[%s2642_s28 + $0xf0] sm:$0xff] %v500_v30  ;;  %503 = vst [vmem:[%s2642_s28 + $0xf8] sm:$0xff] %v502_v31  ;;  %v506_v33 = vld [vmem:[%s2637_s27 + $0x108] sm:$0xff]  ;;  %v508_v34 = vld [vmem:[%s2637_s27 + $0x110] sm:$0xff] }
  0x21   : > { %505 = vst [vmem:[%s2642_s28 + $0x100] sm:$0xff] %v504_v32  ;;  %v510_v35 = vld [vmem:[%s2637_s27 + $0x118] sm:$0xff]  ;;  %507 = vst [vmem:[%s2642_s28 + $0x108] sm:$0xff] %v506_v33  ;;  %v512_v36 = vld [vmem:[%s2637_s27 + $0x120] sm:$0xff] }
  0x22   : > { %509 = vst [vmem:[%s2642_s28 + $0x110] sm:$0xff] %v508_v34  ;;  %511 = vst [vmem:[%s2642_s28 + $0x118] sm:$0xff] %v510_v35  ;;  %v514_v37 = vld [vmem:[%s2637_s27 + $0x128] sm:$0xff]  ;;  %v516_v38 = vld [vmem:[%s2637_s27 + $0x130] sm:$0xff] }
  0x23   : > { %513 = vst [vmem:[%s2642_s28 + $0x120] sm:$0xff] %v512_v36  ;;  %515 = vst [vmem:[%s2642_s28 + $0x128] sm:$0xff] %v514_v37  ;;  %v518_v39 = vld [vmem:[%s2637_s27 + $0x138] sm:$0xff]  ;;  %v520_v40 = vld [vmem:[%s2637_s27 + $0x140] sm:$0xff] }
  0x24   : > { %517 = vst [vmem:[%s2642_s28 + $0x130] sm:$0xff] %v516_v38  ;;  %v522_v41 = vld [vmem:[%s2637_s27 + $0x148] sm:$0xff]  ;;  %519 = vst [vmem:[%s2642_s28 + $0x138] sm:$0xff] %v518_v39  ;;  %v524_v42 = vld [vmem:[%s2637_s27 + $0x150] sm:$0xff] }
  0x25   : > { %521 = vst [vmem:[%s2642_s28 + $0x140] sm:$0xff] %v520_v40  ;;  %523 = vst [vmem:[%s2642_s28 + $0x148] sm:$0xff] %v522_v41  ;;  %v526_v43 = vld [vmem:[%s2637_s27 + $0x158] sm:$0xff]  ;;  %v528_v44 = vld [vmem:[%s2637_s27 + $0x160] sm:$0xff] }
  0x26   : > { %525 = vst [vmem:[%s2642_s28 + $0x150] sm:$0xff] %v524_v42  ;;  %527 = vst [vmem:[%s2642_s28 + $0x158] sm:$0xff] %v526_v43  ;;  %v530_v45 = vld [vmem:[%s2637_s27 + $0x168] sm:$0xff]  ;;  %v532_v46 = vld [vmem:[%s2637_s27 + $0x170] sm:$0xff] }
  0x27   : > { %529 = vst [vmem:[%s2642_s28 + $0x160] sm:$0xff] %v528_v44  ;;  %v534_v47 = vld [vmem:[%s2637_s27 + $0x178] sm:$0xff]  ;;  %531 = vst [vmem:[%s2642_s28 + $0x168] sm:$0xff] %v530_v45  ;;  %v536_v48 = vld [vmem:[%s2637_s27 + $0x180] sm:$0xff] }
  0x28   : > { %533 = vst [vmem:[%s2642_s28 + $0x170] sm:$0xff] %v532_v46  ;;  %535 = vst [vmem:[%s2642_s28 + $0x178] sm:$0xff] %v534_v47  ;;  %v538_v49 = vld [vmem:[%s2637_s27 + $0x188] sm:$0xff]  ;;  %v540_v50 = vld [vmem:[%s2637_s27 + $0x190] sm:$0xff] }
  0x29   : > { %537 = vst [vmem:[%s2642_s28 + $0x180] sm:$0xff] %v536_v48  ;;  %539 = vst [vmem:[%s2642_s28 + $0x188] sm:$0xff] %v538_v49  ;;  %v542_v51 = vld [vmem:[%s2637_s27 + $0x198] sm:$0xff]  ;;  %v544_v52 = vld [vmem:[%s2637_s27 + $0x1a0] sm:$0xff] }
  0x2a   : > { %541 = vst [vmem:[%s2642_s28 + $0x190] sm:$0xff] %v540_v50  ;;  %v546_v53 = vld [vmem:[%s2637_s27 + $0x1a8] sm:$0xff]  ;;  %543 = vst [vmem:[%s2642_s28 + $0x198] sm:$0xff] %v542_v51  ;;  %v548_v54 = vld [vmem:[%s2637_s27 + $0x1b0] sm:$0xff] }
  0x2b   : > { %545 = vst [vmem:[%s2642_s28 + $0x1a0] sm:$0xff] %v544_v52  ;;  %547 = vst [vmem:[%s2642_s28 + $0x1a8] sm:$0xff] %v546_v53  ;;  %v550_v55 = vld [vmem:[%s2637_s27 + $0x1b8] sm:$0xff]  ;;  %v552_v56 = vld [vmem:[%s2637_s27 + $0x1c0] sm:$0xff] }
  0x2c   : > { %549 = vst [vmem:[%s2642_s28 + $0x1b0] sm:$0xff] %v548_v54  ;;  %551 = vst [vmem:[%s2642_s28 + $0x1b8] sm:$0xff] %v550_v55  ;;  %v554_v57 = vld [vmem:[%s2637_s27 + $0x1c8] sm:$0xff]  ;;  %v556_v58 = vld [vmem:[%s2637_s27 + $0x1d0] sm:$0xff] }
  0x2d   : > { %553 = vst [vmem:[%s2642_s28 + $0x1c0] sm:$0xff] %v552_v56  ;;  %v558_v59 = vld [vmem:[%s2637_s27 + $0x1d8] sm:$0xff]  ;;  %555 = vst [vmem:[%s2642_s28 + $0x1c8] sm:$0xff] %v554_v57  ;;  %v560_v60 = vld [vmem:[%s2637_s27 + $0x1e0] sm:$0xff] }
  0x2e   : > { %557 = vst [vmem:[%s2642_s28 + $0x1d0] sm:$0xff] %v556_v58  ;;  %559 = vst [vmem:[%s2642_s28 + $0x1d8] sm:$0xff] %v558_v59  ;;  %v562_v61 = vld [vmem:[%s2637_s27 + $0x1e8] sm:$0xff]  ;;  %v564_v62 = vld [vmem:[%s2637_s27 + $0x1f0] sm:$0xff] }
  0x2f   : > { %561 = vst [vmem:[%s2642_s28 + $0x1e0] sm:$0xff] %v560_v60  ;;  %563 = vst [vmem:[%s2642_s28 + $0x1e8] sm:$0xff] %v562_v61  ;;  %v566_v63 = vld [vmem:[%s2637_s27 + $0x1f8] sm:$0xff]  ;;  %v568_v0 = vld [vmem:[%s2637_s27 + $0x800] sm:$0xff] }
  0x30   : > { %565 = vst [vmem:[%s2642_s28 + $0x1f0] sm:$0xff] %v564_v62  ;;  %v570_v1 = vld [vmem:[%s2637_s27 + $0x808] sm:$0xff]  ;;  %567 = vst [vmem:[%s2642_s28 + $0x1f8] sm:$0xff] %v566_v63  ;;  %v572_v2 = vld [vmem:[%s2637_s27 + $0x810] sm:$0xff] }
  0x31   : > { %569 = vst [vmem:[%s2642_s28 + $0x200] sm:$0xff] %v568_v0  ;;  %571 = vst [vmem:[%s2642_s28 + $0x208] sm:$0xff] %v570_v1  ;;  %v574_v3 = vld [vmem:[%s2637_s27 + $0x818] sm:$0xff]  ;;  %v576_v4 = vld [vmem:[%s2637_s27 + $0x820] sm:$0xff] }
  0x32   : > { %573 = vst [vmem:[%s2642_s28 + $0x210] sm:$0xff] %v572_v2  ;;  %575 = vst [vmem:[%s2642_s28 + $0x218] sm:$0xff] %v574_v3  ;;  %v578_v5 = vld [vmem:[%s2637_s27 + $0x828] sm:$0xff]  ;;  %v580_v6 = vld [vmem:[%s2637_s27 + $0x830] sm:$0xff] }
  0x33   : > { %577 = vst [vmem:[%s2642_s28 + $0x220] sm:$0xff] %v576_v4  ;;  %v582_v7 = vld [vmem:[%s2637_s27 + $0x838] sm:$0xff]  ;;  %579 = vst [vmem:[%s2642_s28 + $0x228] sm:$0xff] %v578_v5  ;;  %v584_v8 = vld [vmem:[%s2637_s27 + $0x840] sm:$0xff] }
  0x34   : > { %581 = vst [vmem:[%s2642_s28 + $0x230] sm:$0xff] %v580_v6  ;;  %583 = vst [vmem:[%s2642_s28 + $0x238] sm:$0xff] %v582_v7  ;;  %v586_v9 = vld [vmem:[%s2637_s27 + $0x848] sm:$0xff]  ;;  %v588_v10 = vld [vmem:[%s2637_s27 + $0x850] sm:$0xff] }
  0x35   : > { %585 = vst [vmem:[%s2642_s28 + $0x240] sm:$0xff] %v584_v8  ;;  %587 = vst [vmem:[%s2642_s28 + $0x248] sm:$0xff] %v586_v9  ;;  %v590_v11 = vld [vmem:[%s2637_s27 + $0x858] sm:$0xff]  ;;  %v592_v12 = vld [vmem:[%s2637_s27 + $0x860] sm:$0xff] }
  0x36   : > { %589 = vst [vmem:[%s2642_s28 + $0x250] sm:$0xff] %v588_v10  ;;  %v594_v13 = vld [vmem:[%s2637_s27 + $0x868] sm:$0xff]  ;;  %591 = vst [vmem:[%s2642_s28 + $0x258] sm:$0xff] %v590_v11  ;;  %v596_v14 = vld [vmem:[%s2637_s27 + $0x870] sm:$0xff] }
  0x37   : > { %593 = vst [vmem:[%s2642_s28 + $0x260] sm:$0xff] %v592_v12  ;;  %595 = vst [vmem:[%s2642_s28 + $0x268] sm:$0xff] %v594_v13  ;;  %v598_v15 = vld [vmem:[%s2637_s27 + $0x878] sm:$0xff]  ;;  %v600_v16 = vld [vmem:[%s2637_s27 + $0x880] sm:$0xff] }
  0x38   : > { %597 = vst [vmem:[%s2642_s28 + $0x270] sm:$0xff] %v596_v14  ;;  %599 = vst [vmem:[%s2642_s28 + $0x278] sm:$0xff] %v598_v15  ;;  %v602_v17 = vld [vmem:[%s2637_s27 + $0x888] sm:$0xff]  ;;  %v604_v18 = vld [vmem:[%s2637_s27 + $0x890] sm:$0xff] }
  0x39   : > { %601 = vst [vmem:[%s2642_s28 + $0x280] sm:$0xff] %v600_v16  ;;  %v606_v19 = vld [vmem:[%s2637_s27 + $0x898] sm:$0xff]  ;;  %603 = vst [vmem:[%s2642_s28 + $0x288] sm:$0xff] %v602_v17  ;;  %v608_v20 = vld [vmem:[%s2637_s27 + $0x8a0] sm:$0xff] }
  0x3a   : > { %605 = vst [vmem:[%s2642_s28 + $0x290] sm:$0xff] %v604_v18  ;;  %607 = vst [vmem:[%s2642_s28 + $0x298] sm:$0xff] %v606_v19  ;;  %v610_v21 = vld [vmem:[%s2637_s27 + $0x8a8] sm:$0xff]  ;;  %v612_v22 = vld [vmem:[%s2637_s27 + $0x8b0] sm:$0xff] }
  0x3b   : > { %609 = vst [vmem:[%s2642_s28 + $0x2a0] sm:$0xff] %v608_v20  ;;  %611 = vst [vmem:[%s2642_s28 + $0x2a8] sm:$0xff] %v610_v21  ;;  %v614_v23 = vld [vmem:[%s2637_s27 + $0x8b8] sm:$0xff]  ;;  %v616_v24 = vld [vmem:[%s2637_s27 + $0x8c0] sm:$0xff] }
  0x3c   : > { %613 = vst [vmem:[%s2642_s28 + $0x2b0] sm:$0xff] %v612_v22  ;;  %v618_v25 = vld [vmem:[%s2637_s27 + $0x8c8] sm:$0xff]  ;;  %615 = vst [vmem:[%s2642_s28 + $0x2b8] sm:$0xff] %v614_v23  ;;  %v620_v26 = vld [vmem:[%s2637_s27 + $0x8d0] sm:$0xff] }
  0x3d   : > { %617 = vst [vmem:[%s2642_s28 + $0x2c0] sm:$0xff] %v616_v24  ;;  %619 = vst [vmem:[%s2642_s28 + $0x2c8] sm:$0xff] %v618_v25  ;;  %v622_v27 = vld [vmem:[%s2637_s27 + $0x8d8] sm:$0xff]  ;;  %v624_v28 = vld [vmem:[%s2637_s27 + $0x8e0] sm:$0xff] }
  0x3e   : > { %621 = vst [vmem:[%s2642_s28 + $0x2d0] sm:$0xff] %v620_v26  ;;  %623 = vst [vmem:[%s2642_s28 + $0x2d8] sm:$0xff] %v622_v27  ;;  %v626_v29 = vld [vmem:[%s2637_s27 + $0x8e8] sm:$0xff]  ;;  %v628_v30 = vld [vmem:[%s2637_s27 + $0x8f0] sm:$0xff] }
  0x3f   : > { %625 = vst [vmem:[%s2642_s28 + $0x2e0] sm:$0xff] %v624_v28  ;;  %v630_v31 = vld [vmem:[%s2637_s27 + $0x8f8] sm:$0xff]  ;;  %627 = vst [vmem:[%s2642_s28 + $0x2e8] sm:$0xff] %v626_v29  ;;  %v632_v32 = vld [vmem:[%s2637_s27 + $0x900] sm:$0xff] }
  0x40   : > { %629 = vst [vmem:[%s2642_s28 + $0x2f0] sm:$0xff] %v628_v30  ;;  %631 = vst [vmem:[%s2642_s28 + $0x2f8] sm:$0xff] %v630_v31  ;;  %v634_v33 = vld [vmem:[%s2637_s27 + $0x908] sm:$0xff]  ;;  %v636_v34 = vld [vmem:[%s2637_s27 + $0x910] sm:$0xff] }
  0x41   : > { %633 = vst [vmem:[%s2642_s28 + $0x300] sm:$0xff] %v632_v32  ;;  %635 = vst [vmem:[%s2642_s28 + $0x308] sm:$0xff] %v634_v33  ;;  %v638_v35 = vld [vmem:[%s2637_s27 + $0x918] sm:$0xff]  ;;  %v640_v36 = vld [vmem:[%s2637_s27 + $0x920] sm:$0xff] }
  0x42   : > { %637 = vst [vmem:[%s2642_s28 + $0x310] sm:$0xff] %v636_v34  ;;  %v642_v37 = vld [vmem:[%s2637_s27 + $0x928] sm:$0xff]  ;;  %639 = vst [vmem:[%s2642_s28 + $0x318] sm:$0xff] %v638_v35  ;;  %v644_v38 = vld [vmem:[%s2637_s27 + $0x930] sm:$0xff] }
  0x43   : > { %641 = vst [vmem:[%s2642_s28 + $0x320] sm:$0xff] %v640_v36  ;;  %643 = vst [vmem:[%s2642_s28 + $0x328] sm:$0xff] %v642_v37  ;;  %v646_v39 = vld [vmem:[%s2637_s27 + $0x938] sm:$0xff]  ;;  %v648_v40 = vld [vmem:[%s2637_s27 + $0x940] sm:$0xff] }
  0x44   : > { %645 = vst [vmem:[%s2642_s28 + $0x330] sm:$0xff] %v644_v38  ;;  %647 = vst [vmem:[%s2642_s28 + $0x338] sm:$0xff] %v646_v39  ;;  %v650_v41 = vld [vmem:[%s2637_s27 + $0x948] sm:$0xff]  ;;  %v652_v42 = vld [vmem:[%s2637_s27 + $0x950] sm:$0xff] }
  0x45   : > { %649 = vst [vmem:[%s2642_s28 + $0x340] sm:$0xff] %v648_v40  ;;  %v654_v43 = vld [vmem:[%s2637_s27 + $0x958] sm:$0xff]  ;;  %651 = vst [vmem:[%s2642_s28 + $0x348] sm:$0xff] %v650_v41  ;;  %v656_v44 = vld [vmem:[%s2637_s27 + $0x960] sm:$0xff] }
  0x46   : > { %653 = vst [vmem:[%s2642_s28 + $0x350] sm:$0xff] %v652_v42  ;;  %655 = vst [vmem:[%s2642_s28 + $0x358] sm:$0xff] %v654_v43  ;;  %v658_v45 = vld [vmem:[%s2637_s27 + $0x968] sm:$0xff]  ;;  %v660_v46 = vld [vmem:[%s2637_s27 + $0x970] sm:$0xff] }
  0x47   : > { %657 = vst [vmem:[%s2642_s28 + $0x360] sm:$0xff] %v656_v44  ;;  %659 = vst [vmem:[%s2642_s28 + $0x368] sm:$0xff] %v658_v45  ;;  %v662_v47 = vld [vmem:[%s2637_s27 + $0x978] sm:$0xff]  ;;  %v664_v48 = vld [vmem:[%s2637_s27 + $0x980] sm:$0xff] }
  0x48   : > { %661 = vst [vmem:[%s2642_s28 + $0x370] sm:$0xff] %v660_v46  ;;  %v666_v49 = vld [vmem:[%s2637_s27 + $0x988] sm:$0xff]  ;;  %663 = vst [vmem:[%s2642_s28 + $0x378] sm:$0xff] %v662_v47  ;;  %v668_v50 = vld [vmem:[%s2637_s27 + $0x990] sm:$0xff] }
  0x49   : > { %665 = vst [vmem:[%s2642_s28 + $0x380] sm:$0xff] %v664_v48  ;;  %667 = vst [vmem:[%s2642_s28 + $0x388] sm:$0xff] %v666_v49  ;;  %v670_v51 = vld [vmem:[%s2637_s27 + $0x998] sm:$0xff]  ;;  %v672_v52 = vld [vmem:[%s2637_s27 + $0x9a0] sm:$0xff] }
  0x4a   : > { %669 = vst [vmem:[%s2642_s28 + $0x390] sm:$0xff] %v668_v50  ;;  %671 = vst [vmem:[%s2642_s28 + $0x398] sm:$0xff] %v670_v51  ;;  %v674_v53 = vld [vmem:[%s2637_s27 + $0x9a8] sm:$0xff]  ;;  %v676_v54 = vld [vmem:[%s2637_s27 + $0x9b0] sm:$0xff] }
  0x4b   : > { %673 = vst [vmem:[%s2642_s28 + $0x3a0] sm:$0xff] %v672_v52  ;;  %v678_v55 = vld [vmem:[%s2637_s27 + $0x9b8] sm:$0xff]  ;;  %675 = vst [vmem:[%s2642_s28 + $0x3a8] sm:$0xff] %v674_v53  ;;  %v680_v56 = vld [vmem:[%s2637_s27 + $0x9c0] sm:$0xff] }
  0x4c   : > { %677 = vst [vmem:[%s2642_s28 + $0x3b0] sm:$0xff] %v676_v54  ;;  %679 = vst [vmem:[%s2642_s28 + $0x3b8] sm:$0xff] %v678_v55  ;;  %v682_v57 = vld [vmem:[%s2637_s27 + $0x9c8] sm:$0xff]  ;;  %v684_v58 = vld [vmem:[%s2637_s27 + $0x9d0] sm:$0xff] }
  0x4d   : > { %681 = vst [vmem:[%s2642_s28 + $0x3c0] sm:$0xff] %v680_v56  ;;  %683 = vst [vmem:[%s2642_s28 + $0x3c8] sm:$0xff] %v682_v57  ;;  %v686_v59 = vld [vmem:[%s2637_s27 + $0x9d8] sm:$0xff]  ;;  %v688_v60 = vld [vmem:[%s2637_s27 + $0x9e0] sm:$0xff] }
  0x4e   : > { %685 = vst [vmem:[%s2642_s28 + $0x3d0] sm:$0xff] %v684_v58  ;;  %v690_v61 = vld [vmem:[%s2637_s27 + $0x9e8] sm:$0xff]  ;;  %687 = vst [vmem:[%s2642_s28 + $0x3d8] sm:$0xff] %v686_v59  ;;  %v692_v62 = vld [vmem:[%s2637_s27 + $0x9f0] sm:$0xff] }
  0x4f   : > { %689 = vst [vmem:[%s2642_s28 + $0x3e0] sm:$0xff] %v688_v60  ;;  %691 = vst [vmem:[%s2642_s28 + $0x3e8] sm:$0xff] %v690_v61  ;;  %v694_v63 = vld [vmem:[%s2637_s27 + $0x9f8] sm:$0xff] }
  0x50   : > { %693 = vst [vmem:[%s2642_s28 + $0x3f0] sm:$0xff] %v692_v62  ;;  %695 = vst [vmem:[%s2642_s28 + $0x3f8] sm:$0xff] %v694_v63 }
  0x51 PF: > { %p2373_p6 = scmp.ge.s32.totalorder %s2569_s16, 1  ;;  %p709_p7 = scmp.lt.s32.totalorder %s2569_s16, 5 }
  0x53   : > { %p710_p8 = pnand %p2373_p6, %p709_p7 }
  0x54   : > { %s716_s29 = sand.u32 (!%p710_p8), 1, %s2553_s12   ;;  %s2375_s30 = sshll.u32 (!%p710_p8), %s2561_s14, 6 }
  0x55   : > { %713 = sbr.rel (%p710_p8) target bundleno = 721 (0x2d1), region = 66  ;;  %s2374_s4 = sshll.u32 (!%p710_p8), %s716_s29, 10 }
  0x56   : > { %p742_p9 = scmp.lt.s32.totalorder (!%p710_p8), %s2375_s30, 255  ;;  %s2906_s9 = scalar_lea.vmem (!%p710_p8), [#allocation3], %s2374_s4 }
  0x57   : > { %p2377_p10 = scmp.ne.s32.totalorder (!%p710_p8), %s2561_s14, 0 }
  0x5a   : > { %s3736_s30 = smov (!%p742_p9, %s2375_s30), 255  ;;  %750 = sbr.rel (%p2377_p10) target bundleno = 97 (0x61), region = 74 }
  0x5b   : > { %s2376_s5 = sshll.u32 %s3736_s30, 3 }
  0x5c   : > { %s2904_s8 = scalar_lea.vmem %s3725_s1, %s2376_s5 }
  0x5f   : > { %v2571_v0 = vmov 0.0  }
  0x60   : > { %751 = vst [vmem:[#allocation2] sm:$0x3] %v2571_v0 }
  0x61 PF: > { %v800_v1 = vld [vmem:[%s2906_s9 + $0x180] sm:$0xff]  ;;  %vm880_vm0 = vcmask 130048   ;;  %v801_v3 = vld [vmem:[%s2906_s9 + $0x188] sm:$0xff]  ;;  %v770_v22 = vld [vmem:[%s2906_s9 + $0x90] sm:$0xff]  ;;  %vm1469_vm1 = vcmask 130112   ;;  %vm1476_vm2 = vcmask 195712  }
  0x62   : > { %v768_v2 = vld [vmem:[%s2906_s9 + $0x80] sm:$0xff]  ;;  %v1025_v4 = vsel %vm880_vm0, %v800_v1, 0.0  ;;  %v769_v6 = vld [vmem:[%s2906_s9 + $0x88] sm:$0xff]  ;;  %v1028_v7 = vsel %vm880_vm0, %v801_v3, 0.0  ;;  %v935_v24 = vsel %vm880_vm0, %v770_v22, 0.0  ;;  %v802_v25 = vld [vmem:[%s2906_s9 + $0x190] sm:$0xff] }
  0x63   : > { %v929_v5 = vsel %vm880_vm0, %v768_v2, 0.0  ;;  %1026 = vadd.xlane.f32.xlu1 %v1025_v4  ;;  %v932_v8 = vsel %vm880_vm0, %v769_v6, 0.0  ;;  %v833_v9 = vld [vmem:[%s2906_s9 + $0x288] sm:$0xff]  ;;  %v832_v10 = vld [vmem:[%s2906_s9 + $0x280] sm:$0xff]  ;;  %v1031_v27 = vsel %vm880_vm0, %v802_v25, 0.0  ;;  %v834_v34 = vld [vmem:[%s2906_s9 + $0x290] sm:$0xff] }
  0x64   : > { %930 = vadd.xlane.f32.xlu0 %v929_v5  ;;  %v1124_v11 = vsel %vm880_vm0, %v833_v9, 0.0  ;;  %v1121_v12 = vsel %vm880_vm0, %v832_v10, 0.0  ;;  %v865_v13 = vld [vmem:[%s2906_s9 + $0x388] sm:$0xff]  ;;  %v864_v14 = vld [vmem:[%s2906_s9 + $0x380] sm:$0xff]  ;;  %v1127_v36 = vsel %vm880_vm0, %v834_v34, 0.0  ;;  %v866_v37 = vld [vmem:[%s2906_s9 + $0x390] sm:$0xff] }
  0x65   : > { %v1220_v15 = vsel %vm880_vm0, %v865_v13, 0.0  ;;  %v1217_v16 = vsel %vm880_vm0, %v864_v14, 0.0  ;;  %v753_v17 = vld [vmem:[%s2906_s9 + $0x8] sm:$0xff]  ;;  %v752_v18 = vld [vmem:[%s2906_s9] sm:$0xff]  ;;  %v1223_v39 = vsel %vm880_vm0, %v866_v37, 0.0  ;;  %v771_v41 = vld [vmem:[%s2906_s9 + $0x98] sm:$0xff] }
  0x66   : > { %v884_v19 = vsel %vm880_vm0, %v753_v17, 0.0  ;;  %v881_v20 = vsel %vm880_vm0, %v752_v18, 0.0  ;;  %v784_v21 = vld [vmem:[%s2906_s9 + $0x100] sm:$0xff]  ;;  %v785_v26 = vld [vmem:[%s2906_s9 + $0x108] sm:$0xff]  ;;  %v754_v42 = vld [vmem:[%s2906_s9 + $0x10] sm:$0xff]  ;;  %v938_v43 = vsel %vm880_vm0, %v771_v41, 0.0 }
  0x67   : > { %1029 = vadd.xlane.f32.xlu1 %v1028_v7  ;;  %v977_v23 = vsel %vm880_vm0, %v784_v21, 0.0  ;;  %v980_v28 = vsel %vm880_vm0, %v785_v26, 0.0  ;;  %v817_v29 = vld [vmem:[%s2906_s9 + $0x208] sm:$0xff]  ;;  %v816_v30 = vld [vmem:[%s2906_s9 + $0x200] sm:$0xff]  ;;  %v887_v44 = vsel %vm880_vm0, %v754_v42, 0.0  ;;  %v803_v45 = vld [vmem:[%s2906_s9 + $0x198] sm:$0xff] }
  0x68   : > { %933 = vadd.xlane.f32.xlu0 %v932_v8  ;;  %v1076_v31 = vsel %vm880_vm0, %v817_v29, 0.0  ;;  %v1073_v32 = vsel %vm880_vm0, %v816_v30, 0.0  ;;  %v848_v33 = vld [vmem:[%s2906_s9 + $0x300] sm:$0xff]  ;;  %v849_v38 = vld [vmem:[%s2906_s9 + $0x308] sm:$0xff]  ;;  %v786_v46 = vld [vmem:[%s2906_s9 + $0x110] sm:$0xff]  ;;  %v1034_v47 = vsel %vm880_vm0, %v803_v45, 0.0 }
  0x69   : > { %v1169_v35 = vsel %vm880_vm0, %v848_v33, 0.0  ;;  %v1172_v40 = vsel %vm880_vm0, %v849_v38, 0.0  ;;  %v983_v48 = vsel %vm880_vm0, %v786_v46, 0.0  ;;  %v835_v49 = vld [vmem:[%s2906_s9 + $0x298] sm:$0xff]  ;;  %v818_v50 = vld [vmem:[%s2906_s9 + $0x210] sm:$0xff]  ;;  %v772_v57 = vld [vmem:[%s2906_s9 + $0xa0] sm:$0xff] }
  0x6a   : > { %v1130_v51 = vsel %vm880_vm0, %v835_v49, 0.0  ;;  %v1079_v52 = vsel %vm880_vm0, %v818_v50, 0.0  ;;  %v867_v53 = vld [vmem:[%s2906_s9 + $0x398] sm:$0xff]  ;;  %v850_v54 = vld [vmem:[%s2906_s9 + $0x310] sm:$0xff]  ;;  %v941_v59 = vsel %vm880_vm0, %v772_v57, 0.0  ;;  %v804_v61 = vld [vmem:[%s2906_s9 + $0x1a0] sm:$0xff] }
  0x6b   : > { %1125 = vadd.xlane.f32.xlu1 %v1124_v11  ;;  %v1226_v55 = vsel %vm880_vm0, %v867_v53, 0.0  ;;  %v1175_v56 = vsel %vm880_vm0, %v850_v54, 0.0  ;;  %v755_v58 = vld [vmem:[%s2906_s9 + $0x18] sm:$0xff]  ;;  %v1037_v63 = vsel %vm880_vm0, %v804_v61, 0.0  ;;  %v836_v1 = vld [vmem:[%s2906_s9 + $0x2a0] sm:$0xff]  ;;  %v773_v9 = vld [vmem:[%s2906_s9 + $0xa8] sm:$0xff] }
  0x6c   : > { %1122 = vadd.xlane.f32.xlu0 %v1121_v12  ;;  %v890_v60 = vsel %vm880_vm0, %v755_v58, 0.0  ;;  %v787_v62 = vld [vmem:[%s2906_s9 + $0x118] sm:$0xff]  ;;  %v1133_v3 = vsel %vm880_vm0, %v836_v1, 0.0  ;;  %v868_v5 = vld [vmem:[%s2906_s9 + $0x3a0] sm:$0xff]  ;;  %v944_v11 = vsel %vm880_vm0, %v773_v9, 0.0  ;;  %v805_v13 = vld [vmem:[%s2906_s9 + $0x1a8] sm:$0xff] }
  0x6d   : > { %v986_v0 = vsel %vm880_vm0, %v787_v62, 0.0  ;;  %v819_v2 = vld [vmem:[%s2906_s9 + $0x218] sm:$0xff]  ;;  %v1229_v7 = vsel %vm880_vm0, %v868_v5, 0.0  ;;  %v756_v10 = vld [vmem:[%s2906_s9 + $0x20] sm:$0xff]  ;;  %v837_v17 = vld [vmem:[%s2906_s9 + $0x2a8] sm:$0xff]  ;;  %vm1483_vm3 = vcmask 261312  }
  0x6e   : > { %v1082_v4 = vsel %vm880_vm0, %v819_v2, 0.0  ;;  %v851_v6 = vld [vmem:[%s2906_s9 + $0x318] sm:$0xff]  ;;  %v893_v12 = vsel %vm880_vm0, %v756_v10, 0.0  ;;  %v788_v14 = vld [vmem:[%s2906_s9 + $0x120] sm:$0xff]  ;;  %v869_v21 = vld [vmem:[%s2906_s9 + $0x3a8] sm:$0xff]  ;;  %vm1490_vm4 = vcmask 326912  }
  0x6f   : > { %1221 = vadd.xlane.f32.xlu1 %v1220_v15  ;;  %v1178_v8 = vsel %vm880_vm0, %v851_v6, 0.0  ;;  %v1040_v15 = vsel %vm880_vm0, %v805_v13, 0.0  ;;  %v820_v18 = vld [vmem:[%s2906_s9 + $0x220] sm:$0xff]  ;;  %v774_v25 = vld [vmem:[%s2906_s9 + $0xb0] sm:$0xff]  ;;  %v757_v26 = vld [vmem:[%s2906_s9 + $0x28] sm:$0xff]  ;;  %vm1497_vm5 = vcmask 392512  }
  0x70   : > { %1218 = vadd.xlane.f32.xlu0 %v1217_v16  ;;  %v989_v16 = vsel %vm880_vm0, %v788_v14, 0.0  ;;  %v852_v22 = vld [vmem:[%s2906_s9 + $0x320] sm:$0xff]  ;;  %v806_v29 = vld [vmem:[%s2906_s9 + $0x1b0] sm:$0xff]  ;;  %v789_v30 = vld [vmem:[%s2906_s9 + $0x128] sm:$0xff]  ;;  %vm1504_vm6 = vcmask 458112   ;;  %vm1511_vm7 = vcmask 523712  }
  0x71   : > { %v838_v33 = vld [vmem:[%s2906_s9 + $0x2b0] sm:$0xff]  ;;  %v821_v34 = vld [vmem:[%s2906_s9 + $0x228] sm:$0xff]  ;;  %v775_v41 = vld [vmem:[%s2906_s9 + $0xb8] sm:$0xff]  ;;  %vm1518_vm8 = vcmask 589312   ;;  %vm1525_vm9 = vcmask 654912   ;;  %vm1532_vm10 = vcmask 720512  }
  0x72   : > { %v870_v37 = vld [vmem:[%s2906_s9 + $0x3b0] sm:$0xff]  ;;  %v853_v38 = vld [vmem:[%s2906_s9 + $0x328] sm:$0xff]  ;;  %v807_v45 = vld [vmem:[%s2906_s9 + $0x1b8] sm:$0xff]  ;;  %vm1539_vm11 = vcmask 786112   ;;  %vm1546_vm12 = vcmask 851712   ;;  %vm1553_vm13 = vcmask 917312  }
  0x73   : > { %885 = vadd.xlane.f32.xlu1 %v884_v19  ;;  %v1136_v19 = vsel %vm880_vm0, %v837_v17, 0.0  ;;  %v758_v42 = vld [vmem:[%s2906_s9 + $0x30] sm:$0xff]  ;;  %v839_v49 = vld [vmem:[%s2906_s9 + $0x2b8] sm:$0xff]  ;;  %v776_v57 = vld [vmem:[%s2906_s9 + $0xc0] sm:$0xff]  ;;  %vm1560_vm14 = vcmask 982912   ;;  %vm1567_vm15 = vcmask 1048512  }
  0x74   : > { %882 = vadd.xlane.f32.xlu0 %v881_v20  ;;  %v1085_v20 = vsel %vm880_vm0, %v820_v18, 0.0  ;;  %v790_v46 = vld [vmem:[%s2906_s9 + $0x130] sm:$0xff]  ;;  %v871_v53 = vld [vmem:[%s2906_s9 + $0x3b8] sm:$0xff]  ;;  %v808_v61 = vld [vmem:[%s2906_s9 + $0x1c0] sm:$0xff]  ;;  %p2378_p11 = scmp.ne.s32.totalorder %s2561_s14, 3 }
  0x75   : > { %v822_v50 = vld [vmem:[%s2906_s9 + $0x230] sm:$0xff]  ;;  %v759_v58 = vld [vmem:[%s2906_s9 + $0x38] sm:$0xff]  ;;  %v840_v1 = vld [vmem:[%s2906_s9 + $0x2c0] sm:$0xff] }
  0x76   : > { %v854_v54 = vld [vmem:[%s2906_s9 + $0x330] sm:$0xff]  ;;  %v791_v62 = vld [vmem:[%s2906_s9 + $0x138] sm:$0xff]  ;;  %v872_v5 = vld [vmem:[%s2906_s9 + $0x3c0] sm:$0xff] }
  0x77   : > { %978 = vadd.xlane.f32.xlu1 %v977_v23  ;;  %v1232_v23 = vsel %vm880_vm0, %v869_v21, 0.0  ;;  %v823_v2 = vld [vmem:[%s2906_s9 + $0x238] sm:$0xff]  ;;  %v777_v10 = vld [vmem:[%s2906_s9 + $0xc8] sm:$0xff]  ;;  %v792_v17 = vld [vmem:[%s2906_s9 + $0x140] sm:$0xff] }
  0x78   : > { %936 = vadd.xlane.f32.xlu0 %v935_v24  ;;  %v1181_v24 = vsel %vm880_vm0, %v852_v22, 0.0  ;;  %v855_v6 = vld [vmem:[%s2906_s9 + $0x338] sm:$0xff]  ;;  %v956_v13 = vsel %vm880_vm0, %v777_v10, 0.0  ;;  %v1001_v22 = vsel %vm880_vm0, %v792_v17, 0.0  ;;  %v857_v10 = vld [vmem:[%s2906_s9 + $0x348] sm:$0xff] }
  0x79   : > { %v1190_v9 = vsel %vm880_vm0, %v855_v6, 0.0  ;;  %v1196_v17 = vsel %vm880_vm0, %v857_v10, 0.0  ;;  %v795_v10 = vld [vmem:[%s2906_s9 + $0x158] sm:$0xff] }
  0x7b   : > { %1032 = vadd.xlane.f32.xlu1 %v1031_v27  ;;  %v947_v27 = vsel %vm880_vm0, %v774_v25, 0.0  ;;  %v841_v25 = vld [vmem:[%s2906_s9 + $0x2c8] sm:$0xff] }
  0x7c   : > { %981 = vadd.xlane.f32.xlu0 %v980_v28  ;;  %v896_v28 = vsel %vm880_vm0, %v757_v26, 0.0  ;;  %v824_v26 = vld [vmem:[%s2906_s9 + $0x240] sm:$0xff] }
  0x7f   : > { %1077 = vadd.xlane.f32.xlu1 %v1076_v31  ;;  %v1043_v31 = vsel %vm880_vm0, %v806_v29, 0.0  ;;  %v1148_v29 = vsel %vm880_vm0, %v841_v25, 0.0 }
  0x80   : > { %1074 = vadd.xlane.f32.xlu0 %v1073_v32  ;;  %v992_v32 = vsel %vm880_vm0, %v789_v30, 0.0  ;;  %v1097_v30 = vsel %vm880_vm0, %v824_v26, 0.0 }
  0x83   : > { %1170 = vadd.xlane.f32.xlu1 %v1169_v35  ;;  %v1139_v35 = vsel %vm880_vm0, %v838_v33, 0.0 }
  0x84   : > { %1128 = vadd.xlane.f32.xlu0 %v1127_v36  ;;  %v1088_v36 = vsel %vm880_vm0, %v821_v34, 0.0 }
  0x87   : > { %1224 = vadd.xlane.f32.xlu1 %v1223_v39  ;;  %v1235_v39 = vsel %vm880_vm0, %v870_v37, 0.0 }
  0x88   : > { %1173 = vadd.xlane.f32.xlu0 %v1172_v40  ;;  %v1184_v40 = vsel %vm880_vm0, %v853_v38, 0.0 }
  0x8b   : > { %939 = vadd.xlane.f32.xlu1 %v938_v43  ;;  %v950_v43 = vsel %vm880_vm0, %v775_v41, 0.0 }
  0x8c   : > { %888 = vadd.xlane.f32.xlu0 %v887_v44  ;;  %v899_v44 = vsel %vm880_vm0, %v758_v42, 0.0 }
  0x8f   : > { %1035 = vadd.xlane.f32.xlu1 %v1034_v47  ;;  %v1046_v47 = vsel %vm880_vm0, %v807_v45, 0.0  ;;  %v778_v45 = vld [vmem:[%s2906_s9 + $0xd0] sm:$0xff] }
  0x90   : > { %984 = vadd.xlane.f32.xlu0 %v983_v48  ;;  %v995_v48 = vsel %vm880_vm0, %v790_v46, 0.0  ;;  %v761_v46 = vld [vmem:[%s2906_s9 + $0x48] sm:$0xff] }
  0x93   : > { %1131 = vadd.xlane.f32.xlu1 %v1130_v51  ;;  %v1142_v51 = vsel %vm880_vm0, %v839_v49, 0.0 }
  0x94   : > { %1080 = vadd.xlane.f32.xlu0 %v1079_v52  ;;  %v1091_v52 = vsel %vm880_vm0, %v822_v50, 0.0  ;;  %v959_v50 = vsel %vm880_vm0, %v778_v45, 0.0 }
  0x97   : > { %1227 = vadd.xlane.f32.xlu1 %v1226_v55  ;;  %v1238_v55 = vsel %vm880_vm0, %v871_v53, 0.0 }
  0x98   : > { %1176 = vadd.xlane.f32.xlu0 %v1175_v56  ;;  %v1187_v56 = vsel %vm880_vm0, %v854_v54, 0.0  ;;  %v810_v54 = vld [vmem:[%s2906_s9 + $0x1d0] sm:$0xff] }
  0x9b   : > { %942 = vadd.xlane.f32.xlu1 %v941_v59  ;;  %v953_v59 = vsel %vm880_vm0, %v776_v57, 0.0 }
  0x9c   : > { %891 = vadd.xlane.f32.xlu0 %v890_v60  ;;  %v902_v60 = vsel %vm880_vm0, %v759_v58, 0.0 }
  0x9f   : > { %1038 = vadd.xlane.f32.xlu1 %v1037_v63  ;;  %v1049_v63 = vsel %vm880_vm0, %v808_v61, 0.0 }
  0xa0   : > { %987 = vadd.xlane.f32.xlu0 %v986_v0  ;;  %v998_v0 = vsel %vm880_vm0, %v791_v62, 0.0 }
  0xa3   : > { %1134 = vadd.xlane.f32.xlu1 %v1133_v3  ;;  %v1145_v3 = vsel %vm880_vm0, %v840_v1, 0.0  ;;  %v842_v1 = vld [vmem:[%s2906_s9 + $0x2d0] sm:$0xff] }
  0xa4   : > { %1083 = vadd.xlane.f32.xlu0 %v1082_v4  ;;  %v1094_v4 = vsel %vm880_vm0, %v823_v2, 0.0  ;;  %v825_v2 = vld [vmem:[%s2906_s9 + $0x248] sm:$0xff]  ;;  %v1151_v6 = vsel %vm880_vm0, %v842_v1, 0.0 }
  0xa7   : > { %1230 = vadd.xlane.f32.xlu1 %v1229_v7  ;;  %v1458_v7 = vlaneseq }
  0xa8   : > { %1179 = vadd.xlane.f32.xlu0 %v1178_v8  ;;  %v1241_v8 = vsel %vm880_vm0, %v872_v5, 0.0 }
  0xab   : > { %945 = vadd.xlane.f32.xlu1 %v944_v11  ;;  %v760_v11 = vld [vmem:[%s2906_s9 + $0x40] sm:$0xff] }
  0xac   : > { %894 = vadd.xlane.f32.xlu0 %v893_v12  ;;  %v3047_v12 = vand.u32 127, %v1458_v7  ;;  %v905_v14 = vsel %vm880_vm0, %v760_v11, 0.0 }
  0xae   : > { %v1464_v18 = vadd.s32 4294967288, %v3047_v12 }
  0xaf   : > { %1041 = vadd.xlane.f32.xlu1 %v1040_v15  ;;  %v3051_v15 = vshrl.u32 %v1458_v7, 7  ;;  %v1100_v7 = vsel %vm880_vm0, %v825_v2, 0.0 }
  0xb0   : > { %990 = vadd.xlane.f32.xlu0 %v989_v16  ;;  %v809_v16 = vld [vmem:[%s2906_s9 + $0x1c8] sm:$0xff] }
  0xb1   : > { %v1052_v21 = vsel %vm880_vm0, %v809_v16, 0.0 }
  0xb3   : > { %1137 = vadd.xlane.f32.xlu1 %v1136_v19 }
  0xb4   : > { %1086 = vadd.xlane.f32.xlu0 %v1085_v20 }
  0xb7   : > { %1233 = vadd.xlane.f32.xlu1 %v1232_v23  ;;  %v3060_v23 = vsub.s32 %v3047_v12, %v3051_v15 }
  0xb8   : > { %1182 = vadd.xlane.f32.xlu0 %v1181_v24  ;;  %v3063_v24 = vsub.s32 %v1464_v18, %v3051_v15 }
  0xbb   : > { %948 = vadd.xlane.f32.xlu1 %v947_v27 }
  0xbc   : > { %897 = vadd.xlane.f32.xlu0 %v896_v28 }
  0xbf   : > { %1044 = vadd.xlane.f32.xlu1 %v1043_v31 }
  0xc0   : > { %993 = vadd.xlane.f32.xlu0 %v992_v32 }
  0xc3   : > { %1140 = vadd.xlane.f32.xlu1 %v1139_v35  ;;  %v873_v35 = vld [vmem:[%s2906_s9 + $0x3c8] sm:$0xff] }
  0xc4   : > { %1089 = vadd.xlane.f32.xlu0 %v1088_v36  ;;  %v856_v36 = vld [vmem:[%s2906_s9 + $0x340] sm:$0xff]  ;;  %v1244_v41 = vsel %vm880_vm0, %v873_v35, 0.0 }
  0xc5   : > { %v1193_v42 = vsel %vm880_vm0, %v856_v36, 0.0 }
  0xc7   : > { %1236 = vadd.xlane.f32.xlu1 %v1235_v39 }
  0xc8   : > { %1185 = vadd.xlane.f32.xlu0 %v1184_v40 }
  0xcb   : > { %951 = vadd.xlane.f32.xlu1 %v950_v43 }
  0xcc   : > { %900 = vadd.xlane.f32.xlu0 %v899_v44 }
  0xcf   : > { %1047 = vadd.xlane.f32.xlu1 %v1046_v47 }
  0xd0   : > { %996 = vadd.xlane.f32.xlu0 %v995_v48 }
  0xd3   : > { %1143 = vadd.xlane.f32.xlu1 %v1142_v51  ;;  %v908_v51 = vsel %vm880_vm0, %v761_v46, 0.0 }
  0xd4   : > { %1092 = vadd.xlane.f32.xlu0 %v1091_v52 }
  0xd7   : > { %1239 = vadd.xlane.f32.xlu1 %v1238_v55  ;;  %v793_v55 = vld [vmem:[%s2906_s9 + $0x148] sm:$0xff] }
  0xd8   : > { %1188 = vadd.xlane.f32.xlu0 %v1187_v56  ;;  %v1471_v56 = vadd.s32 4294967280, %v3047_v12  ;;  %v1004_v61 = vsel %vm880_vm0, %v793_v55, 0.0 }
  0xdb   : > { %954 = vadd.xlane.f32.xlu1 %v953_v59 }
  0xdc   : > { %903 = vadd.xlane.f32.xlu0 %v902_v60  ;;  %v1055_v60 = vsel %vm880_vm0, %v810_v54, 0.0  ;;  %v858_v54 = vld [vmem:[%s2906_s9 + $0x350] sm:$0xff] }
  0xdf   : > { %1050 = vadd.xlane.f32.xlu1 %v1049_v63 }
  0xe0   : > { %999 = vadd.xlane.f32.xlu0 %v998_v0  ;;  %v3101_v0 = vsub.s32 %v1471_v56, %v3051_v15 }
  0xe3   : > { %1146 = vadd.xlane.f32.xlu1 %v1145_v3 }
  0xe4   : > { %1095 = vadd.xlane.f32.xlu0 %v1094_v4 }
  0xe7   : > { %1242 = vadd.xlane.f32.xlu1 %v1241_v8 }
  0xe8   : > { %1191 = vadd.xlane.f32.xlu0 %v1190_v9  ;;  %v874_v9 = vld [vmem:[%s2906_s9 + $0x3d0] sm:$0xff] }
  0xe9   : > { %v1247_v16 = vsel %vm880_vm0, %v874_v9, 0.0  ;;  %v812_v9 = vld [vmem:[%s2906_s9 + $0x1e0] sm:$0xff] }
  0xeb   : > { %957 = vadd.xlane.f32.xlu1 %v956_v13 }
  0xec   : > { %906 = vadd.xlane.f32.xlu0 %v905_v14  ;;  %v1027_v19 = vpop.xlane.xlu1 %1026 }
  0xed   : > { %v931_v20 = vpop.xlane.xlu0 %930  ;;  %v1730_v31 = vrot.slane %v1027_v19, %v3060_v23 }
  0xee   : > { %v1572_v32 = vrot.slane %v931_v20, %v3060_v23 }
  0xef   : > { %1053 = vadd.xlane.f32.xlu1 %v1052_v21  ;;  %v779_v21 = vld [vmem:[%s2906_s9 + $0xd8] sm:$0xff] }
  0xf0   : > { %1002 = vadd.xlane.f32.xlu0 %v1001_v22  ;;  %v1030_v27 = vpop.xlane.xlu1 %1029  ;;  %v762_v22 = vld [vmem:[%s2906_s9 + $0x50] sm:$0xff] }
  0xf1   : > { %v934_v28 = vpop.xlane.xlu0 %933  ;;  %v1734_v33 = vrot.slane %v1030_v27, %v3063_v24 }
  0xf2   : > { %v1576_v34 = vrot.slane %v934_v28, %v3063_v24 }
  0xf3   : > { %v1735_v37 = vsel %vm1469_vm1, %v1734_v33, %v1730_v31  ;;  %1149 = vadd.xlane.f32.xlu1 %v1148_v29  ;;  %v962_v29 = vsel %vm880_vm0, %v779_v21, 0.0  ;;  %v811_v33 = vld [vmem:[%s2906_s9 + $0x1d8] sm:$0xff] }
  0xf4   : > { %v1577_v38 = vsel %vm1469_vm1, %v1576_v34, %v1572_v32  ;;  %1098 = vadd.xlane.f32.xlu0 %v1097_v30  ;;  %v1126_v39 = vpop.xlane.xlu1 %1125  ;;  %v911_v30 = vsel %vm880_vm0, %v762_v22, 0.0  ;;  %v794_v34 = vld [vmem:[%s2906_s9 + $0x150] sm:$0xff]  ;;  %v827_v21 = vld [vmem:[%s2906_s9 + $0x258] sm:$0xff]  ;;  %v1485_v22 = vadd.s32 4294967264, %v3047_v12 }
  0xf5   : > { %v1123_v40 = vpop.xlane.xlu0 %1122  ;;  %v1892_v43 = vrot.slane %v1126_v39, %v3063_v24  ;;  %v1007_v39 = vsel %vm880_vm0, %v794_v34, 0.0  ;;  %v876_v34 = vld [vmem:[%s2906_s9 + $0x3e0] sm:$0xff] }
  0xf6   : > { %v1888_v44 = vrot.slane %v1123_v40, %v3060_v23 }
  0xf7   : > { %1245 = vadd.xlane.f32.xlu1 %v1244_v41  ;;  %v843_v41 = vld [vmem:[%s2906_s9 + $0x2d8] sm:$0xff] }
  0xf8   : > { %v3084_v47 = vsel %vm1469_vm1, %v1892_v43, %v1888_v44  ;;  %1194 = vadd.xlane.f32.xlu0 %v1193_v42  ;;  %v1222_v48 = vpop.xlane.xlu1 %1221  ;;  %v826_v42 = vld [vmem:[%s2906_s9 + $0x250] sm:$0xff]  ;;  %v1478_v43 = vadd.s32 4294967272, %v3047_v12 }
  0xf9   : > { %v1219_v49 = vpop.xlane.xlu0 %1218  ;;  %v2050_v52 = vrot.slane %v1222_v48, %v3063_v24  ;;  %v1154_v48 = vsel %vm880_vm0, %v843_v41, 0.0 }
  0xfa   : > { %v2046_v53 = vrot.slane %v1219_v49, %v3060_v23  ;;  %v1103_v49 = vsel %vm880_vm0, %v826_v42, 0.0 }
  0xfb   : > { %960 = vadd.xlane.f32.xlu1 %v959_v50 }
  0xfc   : > { %v3094_v57 = vsel %vm1469_vm1, %v2050_v52, %v2046_v53  ;;  %909 = vadd.xlane.f32.xlu0 %v908_v51  ;;  %v886_v58 = vpop.xlane.xlu1 %885  ;;  %v3146_v53 = vsub.s32 %v1478_v43, %v3051_v15  ;;  %v781_v43 = vld [vmem:[%s2906_s9 + $0xe8] sm:$0xff] }
  0xfd   : > { %v883_v59 = vpop.xlane.xlu0 %882  ;;  %v1468_v62 = vrot.slane %v886_v58, %v3063_v24 }
  0xfe   : > { %v1463_v63 = vrot.slane %v883_v59, %v3060_v23 }
  0xff   : > { %1056 = vadd.xlane.f32.xlu1 %v1055_v60 }
 0x100   : > { %v3106_v3 = vsel %vm1469_vm1, %v1468_v62, %v1463_v63  ;;  %1005 = vadd.xlane.f32.xlu0 %v1004_v61  ;;  %v979_v4 = vpop.xlane.xlu1 %978  ;;  %v780_v62 = vld [vmem:[%s2906_s9 + $0xe0] sm:$0xff]  ;;  %v763_v63 = vld [vmem:[%s2906_s9 + $0x58] sm:$0xff] }
 0x101   : > { %v937_v5 = vpop.xlane.xlu0 %936  ;;  %v1651_v18 = vrot.slane %v979_v4, %v3060_v23 }
 0x102   : > { %v1581_v8 = vrot.slane %v937_v5, %v3101_v0  ;;  %v965_v5 = vsel %vm880_vm0, %v780_v62, 0.0 }
 0x103   : > { %1152 = vadd.xlane.f32.xlu1 %v1151_v6  ;;  %v914_v6 = vsel %vm880_vm0, %v763_v63, 0.0  ;;  %v845_v63 = vld [vmem:[%s2906_s9 + $0x2e8] sm:$0xff] }
 0x104   : > { %v1582_v11 = vsel %vm1476_vm2, %v1581_v8, %v1577_v38  ;;  %1101 = vadd.xlane.f32.xlu0 %v1100_v7  ;;  %v1033_v13 = vpop.xlane.xlu1 %1032  ;;  %v1058_v38 = vsel %vm880_vm0, %v811_v33, 0.0  ;;  %v3185_v33 = vsub.s32 %v1485_v22, %v3051_v15  ;;  %v782_v22 = vld [vmem:[%s2906_s9 + $0xf0] sm:$0xff] }
 0x105   : > { %v982_v14 = vpop.xlane.xlu0 %981  ;;  %v1739_v19 = vrot.slane %v1033_v13, %v3101_v0 }
 0x106   : > { %v1655_v20 = vrot.slane %v982_v14, %v3063_v24 }
 0x107   : > { %v1740_v25 = vsel %vm1476_vm2, %v1739_v19, %v1735_v37  ;;  %1248 = vadd.xlane.f32.xlu1 %v1247_v16  ;;  %v1061_v16 = vsel %vm880_vm0, %v812_v9, 0.0 }
 0x108   : > { %v1656_v26 = vsel %vm1469_vm1, %v1655_v20, %v1651_v18  ;;  %1197 = vadd.xlane.f32.xlu0 %v1196_v17  ;;  %v1078_v27 = vpop.xlane.xlu1 %1077  ;;  %v1010_v17 = vsel %vm880_vm0, %v795_v10, 0.0  ;;  %v844_v20 = vld [vmem:[%s2906_s9 + $0x2e0] sm:$0xff] }
 0x109   : > { %v1075_v28 = vpop.xlane.xlu0 %1074  ;;  %v1813_v31 = vrot.slane %v1078_v27, %v3063_v24 }
 0x10a   : > { %v1809_v32 = vrot.slane %v1075_v28, %v3060_v23 }
 0x10b   : > { %963 = vadd.xlane.f32.xlu1 %v962_v29  ;;  %v1157_v29 = vsel %vm880_vm0, %v844_v20, 0.0 }
 0x10c   : > { %v3130_v35 = vsel %vm1469_vm1, %v1813_v31, %v1809_v32  ;;  %912 = vadd.xlane.f32.xlu0 %v911_v30  ;;  %v1171_v36 = vpop.xlane.xlu1 %1170  ;;  %v1106_v30 = vsel %vm880_vm0, %v827_v21, 0.0 }
 0x10d   : > { %v1129_v37 = vpop.xlane.xlu0 %1128  ;;  %v1967_v50 = vrot.slane %v1171_v36, %v3060_v23  ;;  %v859_v36 = vld [vmem:[%s2906_s9 + $0x358] sm:$0xff] }
 0x10e   : > { %v1897_v40 = vrot.slane %v1129_v37, %v3101_v0 }
 0x10f   : > { %1059 = vadd.xlane.f32.xlu1 %v1058_v38 }
 0x110   : > { %v1898_v44 = vsel %vm1476_vm2, %v1897_v40, %v3084_v47  ;;  %1008 = vadd.xlane.f32.xlu0 %v1007_v39  ;;  %v1225_v45 = vpop.xlane.xlu1 %1224  ;;  %v875_v47 = vld [vmem:[%s2906_s9 + $0x3d8] sm:$0xff]  ;;  %v1253_v40 = vsel %vm880_vm0, %v876_v34, 0.0 }
 0x111   : > { %v1174_v46 = vpop.xlane.xlu0 %1173  ;;  %v2055_v51 = vrot.slane %v1225_v45, %v3101_v0  ;;  %v1250_v59 = vsel %vm880_vm0, %v875_v47, 0.0 }
 0x112   : > { %v1971_v52 = vrot.slane %v1174_v46, %v3063_v24  ;;  %v1199_v24 = vsel %vm880_vm0, %v858_v54, 0.0  ;;  %v813_v54 = vld [vmem:[%s2906_s9 + $0x1e8] sm:$0xff] }
 0x113   : > { %v2056_v55 = vsel %vm1476_vm2, %v2055_v51, %v3094_v57  ;;  %1155 = vadd.xlane.f32.xlu1 %v1154_v48 }
 0x114   : > { %v1972_v56 = vsel %vm1469_vm1, %v1971_v52, %v1967_v50  ;;  %1104 = vadd.xlane.f32.xlu0 %v1103_v49  ;;  %v940_v23 = vpop.xlane.xlu1 %939  ;;  %v968_v50 = vsel %vm880_vm0, %v781_v43, 0.0 }
 0x115   : > { %v889_v58 = vpop.xlane.xlu0 %888  ;;  %v1586_v60 = vrot.slane %v940_v23, %v3146_v53 }
 0x116   : > { %v1475_v61 = vrot.slane %v889_v58, %v3101_v0 }
 0x117   : > { %v1587_v57 = vsel %vm1483_vm3, %v1586_v60, %v1582_v11  ;;  %1251 = vadd.xlane.f32.xlu1 %v1250_v59 }
 0x118   : > { %v1477_v1 = vsel %vm1476_vm2, %v1475_v61, %v3106_v3  ;;  %1200 = vadd.xlane.f32.xlu0 %v1199_v24  ;;  %v1036_v2 = vpop.xlane.xlu1 %1035  ;;  %v1064_v24 = vsel %vm880_vm0, %v813_v54, 0.0 }
 0x119   : > { %v985_v4 = vpop.xlane.xlu0 %984  ;;  %v1744_v7 = vrot.slane %v1036_v2, %v3146_v53 }
 0x11a   : > { %v1660_v8 = vrot.slane %v985_v4, %v3101_v0 }
 0x11b   : > { %v1745_v11 = vsel %vm1483_vm3, %v1744_v7, %v1740_v25  ;;  %966 = vadd.xlane.f32.xlu1 %v965_v5  ;;  %v1160_v7 = vsel %vm880_vm0, %v845_v63, 0.0 }
 0x11c   : > { %v1661_v3 = vsel %vm1476_vm2, %v1660_v8, %v1656_v26  ;;  %915 = vadd.xlane.f32.xlu0 %v914_v6  ;;  %v1132_v13 = vpop.xlane.xlu1 %1131 }
 0x11d   : > { %v1081_v14 = vpop.xlane.xlu0 %1080  ;;  %v1902_v18 = vrot.slane %v1132_v13, %v3146_v53  ;;  %v860_v13 = vld [vmem:[%s2906_s9 + $0x360] sm:$0xff] }
 0x11e   : > { %v1818_v19 = vrot.slane %v1081_v14, %v3101_v0 }
 0x11f   : > { %v1903_v25 = vsel %vm1483_vm3, %v1902_v18, %v1898_v44  ;;  %1062 = vadd.xlane.f32.xlu1 %v1061_v16  ;;  %v764_v44 = vld [vmem:[%s2906_s9 + $0x60] sm:$0xff] }
 0x120   : > { %v1819_v26 = vsel %vm1476_vm2, %v1818_v19, %v3130_v35  ;;  %1011 = vadd.xlane.f32.xlu0 %v1010_v17  ;;  %v1228_v27 = vpop.xlane.xlu1 %1227  ;;  %v917_v51 = vsel %vm880_vm0, %v764_v44, 0.0  ;;  %v846_v44 = vld [vmem:[%s2906_s9 + $0x2f0] sm:$0xff] }
 0x121   : > { %v1177_v28 = vpop.xlane.xlu0 %1176  ;;  %v2060_v31 = vrot.slane %v1228_v27, %v3146_v53 }
 0x122   : > { %v1976_v32 = vrot.slane %v1177_v28, %v3101_v0  ;;  %v1202_v0 = vsel %vm880_vm0, %v859_v36, 0.0  ;;  %v814_v36 = vld [vmem:[%s2906_s9 + $0x1f0] sm:$0xff] }
 0x123   : > { %v2061_v35 = vsel %vm1483_vm3, %v2060_v31, %v2056_v55  ;;  %1158 = vadd.xlane.f32.xlu1 %v1157_v29  ;;  %v796_v55 = vld [vmem:[%s2906_s9 + $0x160] sm:$0xff] }
 0x124   : > { %v1977_v37 = vsel %vm1476_vm2, %v1976_v32, %v1972_v56  ;;  %1107 = vadd.xlane.f32.xlu0 %v1106_v30  ;;  %v943_v38 = vpop.xlane.xlu1 %942  ;;  %v1013_v60 = vsel %vm880_vm0, %v796_v55, 0.0  ;;  %v971_v30 = vsel %vm880_vm0, %v782_v22, 0.0  ;;  %v1297_v22 = vld [vmem:[%s2904_s8 + $0xf8] sm:$0xff] }
 0x125   : > { %v892_v39 = vpop.xlane.xlu0 %891  ;;  %v1591_v41 = vrot.slane %v943_v38, %v3185_v33  ;;  %2385 = vmatprep.subr.mxu0 %v1297_v22  ;;  %v1291_v22 = vld [vmem:[%s2904_s8 + $0xc8] sm:$0xff] }
 0x126   : > { %v1482_v42 = vrot.slane %v892_v39, %v3146_v53 }
 0x127   : > { %v1592_v45 = vsel %vm1490_vm4, %v1591_v41, %v1587_v57  ;;  %1254 = vadd.xlane.f32.xlu1 %v1253_v40  ;;  %v828_v57 = vld [vmem:[%s2906_s9 + $0x260] sm:$0xff] }
 0x128   : > { %v1484_v46 = vsel %vm1483_vm3, %v1482_v42, %v1477_v1  ;;  %1203 = vadd.xlane.f32.xlu0 %v1202_v0  ;;  %v1039_v48 = vpop.xlane.xlu1 %1038  ;;  %v1492_v1 = vadd.s32 4294967256, %v3047_v12  ;;  %v1109_v8 = vsel %vm880_vm0, %v828_v57, 0.0  ;;  %v1067_v0 = vsel %vm880_vm0, %v814_v36, 0.0 }
 0x129   : > { %v988_v49 = vpop.xlane.xlu0 %987  ;;  %v1749_v52 = vrot.slane %v1039_v48, %v3185_v33 }
 0x12a   : > { %v1665_v47 = vrot.slane %v988_v49, %v3146_v53 }
 0x12b   : > { %v1750_v56 = vsel %vm1490_vm4, %v1749_v52, %v1745_v11  ;;  %969 = vadd.xlane.f32.xlu1 %v968_v50  ;;  %v3221_v11 = vsub.s32 %v1492_v1, %v3051_v15  ;;  %v1163_v52 = vsel %vm880_vm0, %v846_v44, 0.0  ;;  %v783_v1 = vld [vmem:[%s2906_s9 + $0xf8] sm:$0xff]  ;;  %v1327_v44 = vld [vmem:[%s2904_s8 + $0x1e8] sm:$0xff] }
 0x12c   : > { %v1666_v23 = vsel %vm1483_vm3, %v1665_v47, %v1661_v3  ;;  %918 = vadd.xlane.f32.xlu0 %v917_v51  ;;  %v1135_v58 = vpop.xlane.xlu1 %1134  ;;  %v877_v3 = vld [vmem:[%s2906_s9 + $0x3e8] sm:$0xff] }
 0x12d   : > { %v1084_v59 = vpop.xlane.xlu0 %1083  ;;  %v1907_v61 = vrot.slane %v1135_v58, %v3185_v33  ;;  %v1256_v19 = vsel %vm880_vm0, %v877_v3, 0.0  ;;  %v861_v58 = vld [vmem:[%s2906_s9 + $0x368] sm:$0xff] }
 0x12e   : > { %v1823_v62 = vrot.slane %v1084_v59, %v3146_v53 }
 0x12f   : > { %v1908_v2 = vsel %vm1490_vm4, %v1907_v61, %v1903_v25  ;;  %1065 = vadd.xlane.f32.xlu1 %v1064_v24  ;;  %v765_v25 = vld [vmem:[%s2906_s9 + $0x68] sm:$0xff] }
 0x130   : > { %v1824_v4 = vsel %vm1483_vm3, %v1823_v62, %v1819_v26  ;;  %1014 = vadd.xlane.f32.xlu0 %v1013_v60  ;;  %v1231_v5 = vpop.xlane.xlu1 %1230  ;;  %v920_v31 = vsel %vm880_vm0, %v765_v25, 0.0  ;;  %v1329_v25 = vld [vmem:[%s2904_s8 + $0x1f8] sm:$0xff] }
 0x131   : > { %v1180_v6 = vpop.xlane.xlu0 %1179  ;;  %v2065_v9 = vrot.slane %v1231_v5, %v3185_v33  ;;  %2420 = vmatprep.subr.mxu1 %v1329_v25  ;;  %v1323_v25 = vld [vmem:[%s2904_s8 + $0x1c8] sm:$0xff] }
 0x132   : > { %v1981_v10 = vrot.slane %v1180_v6, %v3146_v53  ;;  %v1205_v53 = vsel %vm880_vm0, %v860_v13, 0.0  ;;  %v815_v13 = vld [vmem:[%s2906_s9 + $0x1f8] sm:$0xff] }
 0x133   : > { %v2066_v14 = vsel %vm1490_vm4, %v2065_v9, %v2061_v35  ;;  %1161 = vadd.xlane.f32.xlu1 %v1160_v7  ;;  %v797_v35 = vld [vmem:[%s2906_s9 + $0x168] sm:$0xff] }
 0x134   : > { %v1982_v16 = vsel %vm1483_vm3, %v1981_v10, %v1977_v37  ;;  %1110 = vadd.xlane.f32.xlu0 %v1109_v8  ;;  %v946_v17 = vpop.xlane.xlu1 %945  ;;  %v1016_v41 = vsel %vm880_vm0, %v797_v35, 0.0  ;;  %v974_v8 = vsel %vm880_vm0, %v783_v1, 0.0  ;;  %v1325_v1 = vld [vmem:[%s2904_s8 + $0x1d8] sm:$0xff] }
 0x135   : > { %v895_v18 = vpop.xlane.xlu0 %894  ;;  %v1596_v20 = vrot.slane %v946_v17, %v3221_v11 }
 0x136   : > { %v1489_v21 = vrot.slane %v895_v18, %v3185_v33 }
 0x137   : > { %v1597_v26 = vsel %vm1497_vm5, %v1596_v20, %v1592_v45  ;;  %1257 = vadd.xlane.f32.xlu1 %v1256_v19  ;;  %v829_v45 = vld [vmem:[%s2906_s9 + $0x268] sm:$0xff] }
 0x138   : > { %v1491_v27 = vsel %vm1490_vm4, %v1489_v21, %v1484_v46  ;;  %1206 = vadd.xlane.f32.xlu0 %v1205_v53  ;;  %v1042_v28 = vpop.xlane.xlu1 %1041  ;;  %v1499_v46 = vadd.s32 4294967248, %v3047_v12  ;;  %v1112_v47 = vsel %vm880_vm0, %v829_v45, 0.0  ;;  %v1070_v53 = vsel %vm880_vm0, %v815_v13, 0.0  ;;  %v847_v21 = vld [vmem:[%s2906_s9 + $0x2f8] sm:$0xff] }
 0x139   : > { %v991_v29 = vpop.xlane.xlu0 %990  ;;  %v1754_v32 = vrot.slane %v1042_v28, %v3221_v11  ;;  %v830_v28 = vld [vmem:[%s2906_s9 + $0x270] sm:$0xff] }
 0x13a   : > { %v1670_v34 = vrot.slane %v991_v29, %v3185_v33  ;;  %v1506_v29 = vadd.s32 4294967240, %v3047_v12 }
 0x13b   : > { %v1755_v37 = vsel %vm1497_vm5, %v1754_v32, %v1750_v56  ;;  %972 = vadd.xlane.f32.xlu1 %v971_v30  ;;  %v3257_v56 = vsub.s32 %v1499_v46, %v3051_v15  ;;  %v1281_v30 = vld [vmem:[%s2904_s8 + $0x78] sm:$0xff]  ;;  %v1296_v32 = vld [vmem:[%s2904_s8 + $0xf0] sm:$0xff] }
 0x13c   : > { %v1671_v38 = vsel %vm1490_vm4, %v1670_v34, %v1666_v23  ;;  %921 = vadd.xlane.f32.xlu0 %v920_v31  ;;  %v1138_v39 = vpop.xlane.xlu1 %1137  ;;  %v878_v23 = vld [vmem:[%s2906_s9 + $0x3f0] sm:$0xff]  ;;  %2386 = vmatpush3.msra.mxu0 %v1281_v30 }
 0x13d   : > { %v1087_v40 = vpop.xlane.xlu0 %1086  ;;  %v1912_v42 = vrot.slane %v1138_v39, %v3221_v11  ;;  %v1259_v62 = vsel %vm880_vm0, %v878_v23, 0.0  ;;  %v1313_v31 = vld [vmem:[%s2904_s8 + $0x178] sm:$0xff]  ;;  %v1328_v34 = vld [vmem:[%s2904_s8 + $0x1f0] sm:$0xff]  ;;  %2387 = vmatprep.subr.mxu0 %v1296_v32  ;;  %v1310_v23 = vld [vmem:[%s2904_s8 + $0x160] sm:$0xff] }
 0x13e   : > { %v1828_v43 = vrot.slane %v1087_v40, %v3185_v33  ;;  %2421 = vmatpush3.msra.mxu1 %v1313_v31 }
 0x13f   : > { %v1913_v48 = vsel %vm1497_vm5, %v1912_v42, %v1908_v2  ;;  %1068 = vadd.xlane.f32.xlu1 %v1067_v0  ;;  %v766_v2 = vld [vmem:[%s2906_s9 + $0x70] sm:$0xff]  ;;  %v1166_v0 = vsel %vm880_vm0, %v847_v21, 0.0  ;;  %v879_v42 = vld [vmem:[%s2906_s9 + $0x3f8] sm:$0xff]  ;;  %2422 = vmatprep.subr.mxu1 %v1328_v34 }
 0x140   : > { %v1829_v49 = vsel %vm1490_vm4, %v1828_v43, %v1824_v4  ;;  %1017 = vadd.xlane.f32.xlu0 %v1016_v41  ;;  %v1234_v50 = vpop.xlane.xlu1 %1233  ;;  %v923_v9 = vsel %vm880_vm0, %v766_v2, 0.0  ;;  %v1115_v41 = vsel %vm880_vm0, %v830_v28, 0.0  ;;  %v1295_v43 = vld [vmem:[%s2904_s8 + $0xe8] sm:$0xff]  ;;  %v1277_v2 = vld [vmem:[%s2904_s8 + $0x58] sm:$0xff]  ;;  %v1308_v21 = vld [vmem:[%s2904_s8 + $0x150] sm:$0xff] }
 0x141   : > { %v1183_v51 = vpop.xlane.xlu0 %1182  ;;  %v2070_v54 = vrot.slane %v1234_v50, %v3221_v11  ;;  %v1279_v50 = vld [vmem:[%s2904_s8 + $0x68] sm:$0xff] }
 0x142   : > { %v1986_v55 = vrot.slane %v1183_v51, %v3185_v33  ;;  %v1208_v33 = vsel %vm880_vm0, %v861_v58, 0.0  ;;  %v1311_v51 = vld [vmem:[%s2904_s8 + $0x168] sm:$0xff] }
 0x143   : > { %v3262_v59 = vsel %vm1497_vm5, %v2070_v54, %v2066_v14  ;;  %1164 = vadd.xlane.f32.xlu1 %v1163_v52  ;;  %v798_v14 = vld [vmem:[%s2906_s9 + $0x170] sm:$0xff]  ;;  %v1294_v52 = vld [vmem:[%s2904_s8 + $0xe0] sm:$0xff]  ;;  %v1275_v28 = vld [vmem:[%s2904_s8 + $0x48] sm:$0xff] }
 0x144   : > { %v3265_v24 = vsel %vm1490_vm4, %v1986_v55, %v1982_v16  ;;  %1113 = vadd.xlane.f32.xlu0 %v1112_v47  ;;  %v949_v60 = vpop.xlane.xlu1 %948  ;;  %v1019_v20 = vsel %vm880_vm0, %v798_v14, 0.0  ;;  %v1326_v47 = vld [vmem:[%s2904_s8 + $0x1e0] sm:$0xff] }
 0x145   : > { %v898_v61 = vpop.xlane.xlu0 %897  ;;  %v1601_v63 = vrot.slane %v949_v60, %v3257_v56  ;;  %v1278_v55 = vld [vmem:[%s2904_s8 + $0x60] sm:$0xff] }
 0x146   : > { %v1496_v57 = vrot.slane %v898_v61, %v3221_v11  ;;  %v1262_v61 = vsel %vm880_vm0, %v879_v42, 0.0 }
 0x147   : > { %v3274_v4 = vsel %vm1504_vm6, %v1601_v63, %v1597_v26  ;;  %1260 = vadd.xlane.f32.xlu1 %v1259_v62  ;;  %v799_v62 = vld [vmem:[%s2906_s9 + $0x178] sm:$0xff] }
 0x148   : > { %v3277_v5 = vsel %vm1497_vm5, %v1496_v57, %v1491_v27  ;;  %1209 = vadd.xlane.f32.xlu0 %v1208_v33  ;;  %v1045_v6 = vpop.xlane.xlu1 %1044  ;;  %v767_v63 = vld [vmem:[%s2906_s9 + $0x78] sm:$0xff]  ;;  %v1022_v14 = vsel %vm880_vm0, %v799_v62, 0.0 }
 0x149   : > { %v994_v7 = vpop.xlane.xlu0 %993  ;;  %v1759_v10 = vrot.slane %v1045_v6, %v3257_v56  ;;  %v1293_v57 = vld [vmem:[%s2904_s8 + $0xd8] sm:$0xff] }
 0x14a   : > { %v1675_v3 = vrot.slane %v994_v7, %v3221_v11  ;;  %v1309_v6 = vld [vmem:[%s2904_s8 + $0x158] sm:$0xff] }
 0x14b   : > { %v3286_v16 = vsel %vm1504_vm6, %v1759_v10, %v1755_v37  ;;  %975 = vadd.xlane.f32.xlu1 %v974_v8  ;;  %v1280_v37 = vld [vmem:[%s2904_s8 + $0x70] sm:$0xff] }
 0x14c   : > { %v3289_v17 = vsel %vm1497_vm5, %v1675_v3, %v1671_v38  ;;  %924 = vadd.xlane.f32.xlu0 %v923_v9  ;;  %v1141_v18 = vpop.xlane.xlu1 %1140  ;;  %v1312_v38 = vld [vmem:[%s2904_s8 + $0x170] sm:$0xff]  ;;  %2388 = vmatpush3.msra.mxu0 %v1280_v37  ;;  %v1513_v37 = vadd.s32 4294967232, %v3047_v12 }
 0x14d   : > { %v1090_v19 = vpop.xlane.xlu0 %1089  ;;  %v1917_v26 = vrot.slane %v1141_v18, %v3257_v56  ;;  %2423 = vmatpush3.msra.mxu1 %v1312_v38  ;;  %2389 = vmatprep.subr.mxu0 %v1295_v43  ;;  %v1292_v9 = vld [vmem:[%s2904_s8 + $0xd0] sm:$0xff]  ;;  %v926_v18 = vsel %vm880_vm0, %v767_v63, 0.0  ;;  %v1290_v38 = vld [vmem:[%s2904_s8 + $0xc0] sm:$0xff]  ;;  %v1289_v43 = vld [vmem:[%s2904_s8 + $0xb8] sm:$0xff] }
 0x14e   : > { %v1833_v27 = vrot.slane %v1090_v19, %v3221_v11  ;;  %2424 = vmatprep.subr.mxu1 %v1327_v44  ;;  %2390 = vmatpush3.msra.mxu0 %v1279_v50  ;;  %v1324_v10 = vld [vmem:[%s2904_s8 + $0x1d0] sm:$0xff]  ;;  %v1321_v44 = vld [vmem:[%s2904_s8 + $0x1b8] sm:$0xff]  ;;  %v1286_v63 = vld [vmem:[%s2904_s8 + $0xa0] sm:$0xff] }
 0x14f   : > { %v3305_v36 = vsel %vm1504_vm6, %v1917_v26, %v1913_v48  ;;  %1071 = vadd.xlane.f32.xlu1 %v1070_v53  ;;  %v3320_v48 = vsub.s32 %v1506_v29, %v3051_v15  ;;  %2425 = vmatpush3.msra.mxu1 %v1311_v51  ;;  %v831_v53 = vld [vmem:[%s2906_s9 + $0x278] sm:$0xff]  ;;  %v1307_v29 = vld [vmem:[%s2904_s8 + $0x148] sm:$0xff]  ;;  %v3401_v51 = vsub.s32 %v1513_v37, %v3051_v15 }
 0x150   : > { %v3308_v35 = vsel %vm1497_vm5, %v1833_v27, %v1829_v49  ;;  %1020 = vadd.xlane.f32.xlu0 %v1019_v20  ;;  %v1237_v39 = vpop.xlane.xlu1 %1236  ;;  %v862_v49 = vld [vmem:[%s2906_s9 + $0x370] sm:$0xff]  ;;  %2391 = vmatprep.subr.mxu0 %v1294_v52  ;;  %v1118_v34 = vsel %vm880_vm0, %v831_v53, 0.0  ;;  %v1266_v37 = vld [vmem:[%s2904_s8] sm:$0xff] }
 0x151   : > { %v1186_v40 = vpop.xlane.xlu0 %1185  ;;  %v2075_v45 = vrot.slane %v1237_v39, %v3257_v56  ;;  %2426 = vmatprep.subr.mxu1 %v1326_v47  ;;  %2392 = vmatpush3.msra.mxu0 %v1278_v55  ;;  %v1276_v20 = vld [vmem:[%s2904_s8 + $0x50] sm:$0xff]  ;;  %v1322_v39 = vld [vmem:[%s2904_s8 + $0x1c0] sm:$0xff]  ;;  %v1305_v50 = vld [vmem:[%s2904_s8 + $0x138] sm:$0xff] }
 0x152   : > { %v1991_v46 = vrot.slane %v1186_v40, %v3221_v11  ;;  %2427 = vmatpush3.msra.mxu1 %v1310_v23  ;;  %2393 = vmatprep.subr.mxu0 %v1293_v57  ;;  %v1274_v40 = vld [vmem:[%s2904_s8 + $0x40] sm:$0xff]  ;;  %v1288_v52 = vld [vmem:[%s2904_s8 + $0xb0] sm:$0xff] }
 0x153   : > { %v3329_v54 = vsel %vm1504_vm6, %v2075_v45, %v3262_v59  ;;  %1167 = vadd.xlane.f32.xlu1 %v1166_v0  ;;  %v1211_v59 = vsel %vm880_vm0, %v862_v49, 0.0  ;;  %2428 = vmatprep.subr.mxu1 %v1325_v1  ;;  %v1306_v0 = vld [vmem:[%s2904_s8 + $0x140] sm:$0xff]  ;;  %v1273_v49 = vld [vmem:[%s2904_s8 + $0x38] sm:$0xff]  ;;  %v1320_v47 = vld [vmem:[%s2904_s8 + $0x1b0] sm:$0xff] }
 0x154   : > { %v3333_v11 = vsel %vm1497_vm5, %v1991_v46, %v3265_v24  ;;  %1116 = vadd.xlane.f32.xlu0 %v1115_v41  ;;  %v952_v58 = vpop.xlane.xlu1 %951  ;;  %2394 = vmatpush3.msra.mxu0 %v1277_v2  ;;  %v1272_v55 = vld [vmem:[%s2904_s8 + $0x30] sm:$0xff]  ;;  %v1318_v57 = vld [vmem:[%s2904_s8 + $0x1a0] sm:$0xff] }
 0x155   : > { %v901_v60 = vpop.xlane.xlu0 %900  ;;  %v1606_v24 = vrot.slane %v952_v58, %v3320_v48  ;;  %2429 = vmatpush3.msra.mxu1 %v1309_v6  ;;  %2395 = vmatprep.subr.mxu0 %v1292_v9  ;;  %v1304_v23 = vld [vmem:[%s2904_s8 + $0x130] sm:$0xff]  ;;  %v1270_v1 = vld [vmem:[%s2904_s8 + $0x20] sm:$0xff] }
 0x156   : > { %v1503_v33 = vrot.slane %v901_v60, %v3257_v56  ;;  %2430 = vmatprep.subr.mxu1 %v1324_v10  ;;  %2396 = vmatpush3.msra.mxu0 %v1276_v20  ;;  %v1287_v60 = vld [vmem:[%s2904_s8 + $0xa8] sm:$0xff]  ;;  %v1302_v2 = vld [vmem:[%s2904_s8 + $0x120] sm:$0xff]  ;;  %v1285_v10 = vld [vmem:[%s2904_s8 + $0x98] sm:$0xff] }
 0x157   : > { %v3349_v7 = vsel %vm1511_vm7, %v1606_v24, %v3274_v4  ;;  %1263 = vadd.xlane.f32.xlu1 %v1262_v61  ;;  %v863_v4 = vld [vmem:[%s2906_s9 + $0x378] sm:$0xff]  ;;  %2431 = vmatpush3.msra.mxu1 %v1308_v21  ;;  %v1319_v61 = vld [vmem:[%s2904_s8 + $0x1a8] sm:$0xff]  ;;  %v1268_v53 = vld [vmem:[%s2904_s8 + $0x10] sm:$0xff] }
 0x158   : > { %v3353_v8 = vsel %vm1504_vm6, %v1503_v33, %v3277_v5  ;;  %1212 = vadd.xlane.f32.xlu0 %v1211_v59  ;;  %v1048_v3 = vpop.xlane.xlu1 %1047  ;;  %v1214_v32 = vsel %vm880_vm0, %v863_v4, 0.0  ;;  %2397 = vmatprep.subr.mxu0 %v1291_v22  ;;  %v1271_v24 = vld [vmem:[%s2904_s8 + $0x28] sm:$0xff]  ;;  %v1300_v20 = vld [vmem:[%s2904_s8 + $0x110] sm:$0xff]  ;;  %vm2122_vm0 = vcmask 1041409  }
 0x159   : > { %v997_v13 = vpop.xlane.xlu0 %996  ;;  %v1764_v5 = vrot.slane %v1048_v3, %v3320_v48  ;;  %2432 = vmatprep.subr.mxu1 %v1323_v25  ;;  %2398 = vmatpush3.msra.mxu0 %v1275_v28  ;;  %v1317_v3 = vld [vmem:[%s2904_s8 + $0x198] sm:$0xff]  ;;  %v1283_v25 = vld [vmem:[%s2904_s8 + $0x88] sm:$0xff] }
 0x15a   : > { %v1680_v19 = vrot.slane %v997_v13, %v3257_v56  ;;  %2433 = vmatpush3.msra.mxu1 %v1307_v29  ;;  %2399 = vmatprep.subr.mxu0 %v1290_v38  ;;  %v1315_v28 = vld [vmem:[%s2904_s8 + $0x188] sm:$0xff]  ;;  %v1298_v38 = vld [vmem:[%s2904_s8 + $0x100] sm:$0xff] }
 0x15b   : > { %v3369_v26 = vsel %vm1511_vm7, %v1764_v5, %v3286_v16  ;;  %1023 = vadd.xlane.f32.xlu1 %v1022_v14  ;;  %2434 = vmatprep.subr.mxu1 %v1322_v39  ;;  %v1284_v5 = vld [vmem:[%s2904_s8 + $0x90] sm:$0xff] }
 0x15c   : > { %v3373_v27 = vsel %vm1504_vm6, %v1680_v19, %v3289_v17  ;;  %927 = vadd.xlane.f32.xlu0 %v926_v18  ;;  %v1144_v30 = vpop.xlane.xlu1 %1143  ;;  %2400 = vmatpush3.msra.mxu0 %v1274_v40  ;;  %v1269_v18 = vld [vmem:[%s2904_s8 + $0x18] sm:$0xff]  ;;  %v1316_v19 = vld [vmem:[%s2904_s8 + $0x190] sm:$0xff] }
 0x15d   : > { %v1093_v31 = vpop.xlane.xlu0 %1092  ;;  %v1922_v16 = vrot.slane %v1144_v30, %v3320_v48  ;;  %2435 = vmatpush3.msra.mxu1 %v1306_v0  ;;  %2401 = vmatprep.subr.mxu0 %v1289_v43 }
 0x15e   : > { %v1838_v17 = vrot.slane %v1093_v31, %v3257_v56  ;;  %2436 = vmatprep.subr.mxu1 %v1321_v44  ;;  %2402 = vmatpush3.msra.mxu0 %v1273_v49  ;;  %v1267_v31 = vld [vmem:[%s2904_s8 + $0x8] sm:$0xff] }
 0x15f   : > { %v3388_v41 = vsel %vm1511_vm7, %v1922_v16, %v3305_v36  ;;  %1215 = vadd.xlane.f32.xlu1 %v1214_v32  ;;  %2437 = vmatpush3.msra.mxu1 %v1305_v50  ;;  %v1299_v32 = vld [vmem:[%s2904_s8 + $0x108] sm:$0xff]  ;;  %v1282_v16 = vld [vmem:[%s2904_s8 + $0x80] sm:$0xff] }
 0x160   : > { %v3392_v42 = vsel %vm1504_vm6, %v1838_v17, %v3308_v35  ;;  %1119 = vadd.xlane.f32.xlu0 %v1118_v34  ;;  %v1240_v45 = vpop.xlane.xlu1 %1239  ;;  %2403 = vmatprep.subr.mxu0 %v1288_v52  ;;  %v1314_v17 = vld [vmem:[%s2904_s8 + $0x180] sm:$0xff] }
 0x161   : > { %v1189_v46 = vpop.xlane.xlu0 %1188  ;;  %v2080_v36 = vrot.slane %v1240_v45, %v3320_v48  ;;  %2438 = vmatprep.subr.mxu1 %v1320_v47  ;;  %2404 = vmatpush3.msra.mxu0 %v1272_v55 }
 0x162   : > { %v1996_v35 = vrot.slane %v1189_v46, %v3257_v56  ;;  %2439 = vmatpush3.msra.mxu1 %v1304_v23  ;;  %2405 = vmatprep.subr.mxu0 %v1287_v60 }
 0x163   : > { %v3409_v58 = vsel %vm1511_vm7, %v2080_v36, %v3329_v54  ;;  %v1303_v54 = vld [vmem:[%s2904_s8 + $0x128] sm:$0xff]  ;;  %2440 = vmatprep.subr.mxu1 %v1319_v61  ;;  %2406 = vmatpush3.msra.mxu0 %v1271_v24 }
 0x164   : > { %v3413_v56 = vsel %vm1504_vm6, %v1996_v35, %v3333_v11  ;;  %v955_v59 = vpop.xlane.xlu1 %954  ;;  %2441 = vmatpush3.msra.mxu1 %v1303_v54  ;;  %2407 = vmatprep.subr.mxu0 %v1286_v63  ;;  %v1527_v54 = vadd.s32 4294967216, %v3047_v12 }
 0x165   : > { %v904_v62 = vpop.xlane.xlu0 %903  ;;  %v1611_v11 = vrot.slane %v955_v59, %v3401_v51  ;;  %2442 = vmatprep.subr.mxu1 %v1318_v57  ;;  %2408 = vmatpush3.msra.mxu0 %v1270_v1 }
 0x166   : > { %v1510_v33 = vrot.slane %v904_v62, %v3320_v48  ;;  %2443 = vmatpush3.msra.mxu1 %v1302_v2  ;;  %2409 = vmatprep.subr.mxu0 %v1285_v10 }
 0x167   : > { %v3427_v6 = vsel %vm1518_vm8, %v1611_v11, %v3349_v7  ;;  %v1301_v7 = vld [vmem:[%s2904_s8 + $0x118] sm:$0xff]  ;;  %2444 = vmatprep.subr.mxu1 %v1317_v3  ;;  %2410 = vmatpush3.msra.mxu0 %v1269_v18 }
 0x168   : > { %v3431_v9 = vsel %vm1511_vm7, %v1510_v33, %v3353_v8  ;;  %v1051_v13 = vpop.xlane.xlu1 %1050  ;;  %2445 = vmatpush3.msra.mxu1 %v1301_v7  ;;  %2411 = vmatprep.subr.mxu0 %v1284_v5 }
 0x169   : > { %v1000_v14 = vpop.xlane.xlu0 %999  ;;  %v1769_v4 = vrot.slane %v1051_v13, %v3401_v51  ;;  %2446 = vmatprep.subr.mxu1 %v1316_v19  ;;  %2412 = vmatpush3.msra.mxu0 %v1268_v53 }
 0x16a   : > { %v1685_v8 = vrot.slane %v1000_v14, %v3320_v48  ;;  %2447 = vmatpush3.msra.mxu1 %v1300_v20  ;;  %2413 = vmatprep.subr.mxu0 %v1283_v25 }
 0x16b   : > { %v1770_v21 = vsel %vm1518_vm8, %v1769_v4, %v3369_v26  ;;  %2448 = vmatprep.subr.mxu1 %v1315_v28  ;;  %2414 = vmatpush3.msra.mxu0 %v1267_v31 }
 0x16c   : > { %v1686_v22 = vsel %vm1511_vm7, %v1685_v8, %v3373_v27  ;;  %v1147_v29 = vpop.xlane.xlu1 %1146  ;;  %v1520_v27 = vadd.s32 4294967224, %v3047_v12  ;;  %2449 = vmatpush3.msra.mxu1 %v1299_v32  ;;  %2415 = vmatprep.subr.mxu0 %v1282_v16 }
 0x16d   : > { %v1096_v30 = vpop.xlane.xlu0 %1095  ;;  %v1927_v34 = vrot.slane %v1147_v29, %v3401_v51  ;;  %2450 = vmatprep.subr.mxu1 %v1314_v17  ;;  %2416 = vmatpush3.msra.mxu0 %v1266_v37  ;;  %v1534_v29 = vadd.s32 4294967208, %v3047_v12 }
 0x16e   : > { %v1843_v26 = vrot.slane %v1096_v30, %v3320_v48  ;;  %v1523_v46 = vsub.s32 %v1520_v27, %v3051_v15  ;;  %2451 = vmatpush3.msra.mxu1 %v1298_v38 }
 0x16f   : > { %v1928_v39 = vsel %vm1518_vm8, %v1927_v34, %v3388_v41  ;;  %v3495_v16 = vsub.s32 %v1534_v29, %v3051_v15 }
 0x170   : > { %v1844_v40 = vsel %vm1511_vm7, %v1843_v26, %v3392_v42  ;;  %v1243_v0 = vpop.xlane.xlu1 %1242 }
 0x171   : > { %v1192_v43 = vpop.xlane.xlu0 %1191  ;;  %v2085_v44 = vrot.slane %v1243_v0, %v3401_v51 }
 0x172   : > { %v2001_v45 = vrot.slane %v1192_v43, %v3320_v48 }
 0x173   : > { %v2086_v41 = vsel %vm1518_vm8, %v2085_v44, %v3409_v58 }
 0x174   : > { %v2002_v42 = vsel %vm1511_vm7, %v2001_v45, %v3413_v56  ;;  %v958_v49 = vpop.xlane.xlu1 %957 }
 0x175   : > { %v907_v50 = vpop.xlane.xlu0 %906  ;;  %v1616_v36 = vrot.slane %v958_v49, %v1523_v46 }
 0x176   : > { %v1517_v35 = vrot.slane %v907_v50, %v3401_v51 }
 0x177   : > { %v1617_v52 = vsel %vm1525_vm9, %v1616_v36, %v3427_v6  ;;  %v1530_v6 = vsub.s32 %v1527_v54, %v3051_v15 }
 0x178   : > { %v1519_v48 = vsel %vm1518_vm8, %v1517_v35, %v3431_v9  ;;  %v1054_v47 = vpop.xlane.xlu1 %1053 }
 0x179   : > { %v1003_v55 = vpop.xlane.xlu0 %1002  ;;  %v1774_v23 = vrot.slane %v1054_v47, %v1523_v46 }
 0x17a   : > { %v1690_v58 = vrot.slane %v1003_v55, %v3401_v51 }
 0x17b   : > { %v1775_v60 = vsel %vm1525_vm9, %v1774_v23, %v1770_v21 }
 0x17c   : > { %v1691_v56 = vsel %vm1518_vm8, %v1690_v58, %v1686_v22  ;;  %v1150_v61 = vpop.xlane.xlu1 %1149 }
 0x17d   : > { %v1099_v59 = vpop.xlane.xlu0 %1098  ;;  %v1932_v62 = vrot.slane %v1150_v61, %v1523_v46 }
 0x17e   : > { %v1848_v24 = vrot.slane %v1099_v59, %v3401_v51 }
 0x17f   : > { %v1933_v11 = vsel %vm1525_vm9, %v1932_v62, %v1928_v39 }
 0x180   : > { %v1849_v33 = vsel %vm1518_vm8, %v1848_v24, %v1844_v40  ;;  %v1246_v63 = vpop.xlane.xlu1 %1245 }
 0x181   : > { %v1195_v57 = vpop.xlane.xlu0 %1194  ;;  %v2090_v1 = vrot.slane %v1246_v63, %v1523_v46 }
 0x182   : > { %v2006_v2 = vrot.slane %v1195_v57, %v3401_v51 }
 0x183   : > { %v2091_v9 = vsel %vm1525_vm9, %v2090_v1, %v2086_v41 }
 0x184   : > { %v2007_v10 = vsel %vm1518_vm8, %v2006_v2, %v2002_v42  ;;  %v961_v3 = vpop.xlane.xlu1 %960 }
 0x185   : > { %v910_v13 = vpop.xlane.xlu0 %909  ;;  %v1621_v14 = vrot.slane %v961_v3, %v1530_v6 }
 0x186   : > { %v1524_v18 = vrot.slane %v910_v13, %v1523_v46 }
 0x187   : > { %v1622_v7 = vsel %vm1532_vm10, %v1621_v14, %v1617_v52 }
 0x188   : > { %v1526_v4 = vsel %vm1525_vm9, %v1524_v18, %v1519_v48  ;;  %v1057_v8 = vpop.xlane.xlu1 %1056 }
 0x189   : > { %v1006_v5 = vpop.xlane.xlu0 %1005  ;;  %v1779_v19 = vrot.slane %v1057_v8, %v1530_v6 }
 0x18a   : > { %v1695_v53 = vrot.slane %v1006_v5, %v1523_v46 }
 0x18b   : > { %v1780_v51 = vsel %vm1532_vm10, %v1779_v19, %v1775_v60  ;;  %v1541_v19 = vadd.s32 4294967200, %v3047_v12 }
 0x18c   : > { %v1696_v20 = vsel %vm1525_vm9, %v1695_v53, %v1691_v56  ;;  %v1153_v21 = vpop.xlane.xlu1 %1152  ;;  %v1548_v53 = vadd.s32 4294967192, %v3047_v12 }
 0x18d   : > { %v1102_v22 = vpop.xlane.xlu0 %1101  ;;  %v1937_v25 = vrot.slane %v1153_v21, %v1530_v6  ;;  %v1555_v21 = vadd.s32 4294967184, %v3047_v12 }
 0x18e   : > { %v1853_v28 = vrot.slane %v1102_v22, %v1523_v46  ;;  %v3563_v22 = vsub.s32 %v1541_v19, %v3051_v15 }
 0x18f   : > { %v3491_v30 = vsel %vm1532_vm10, %v1937_v25, %v1933_v11  ;;  %v1562_v25 = vadd.s32 4294967176, %v3047_v12 }
 0x190   : > { %v1854_v31 = vsel %vm1525_vm9, %v1853_v28, %v1849_v33  ;;  %v1249_v32 = vpop.xlane.xlu1 %1248  ;;  %v3567_v28 = vsub.s32 %v1548_v53, %v3051_v15 }
 0x191   : > { %v1198_v34 = vpop.xlane.xlu0 %1197  ;;  %v2095_v26 = vrot.slane %v1249_v32, %v1530_v6 }
 0x192   : > { %v2011_v27 = vrot.slane %v1198_v34, %v1523_v46  ;;  %v3573_v34 = vsub.s32 %v1555_v21, %v3051_v15 }
 0x193   : > { %v3498_v17 = vsel %vm1532_vm10, %v2095_v26, %v2091_v9 }
 0x194   : > { %v2012_v37 = vsel %vm1525_vm9, %v2011_v27, %v2007_v10  ;;  %v964_v38 = vpop.xlane.xlu1 %963  ;;  %v3577_v27 = vsub.s32 %v1562_v25, %v3051_v15 }
 0x195   : > { %v913_v39 = vpop.xlane.xlu0 %912  ;;  %v1626_v40 = vrot.slane %v964_v38, %v3495_v16 }
 0x196   : > { %v1531_v0 = vrot.slane %v913_v39, %v1530_v6 }
 0x197   : > { %v3503_v43 = vsel %vm1539_vm11, %v1626_v40, %v1622_v7 }
 0x198   : > { %v1533_v44 = vsel %vm1532_vm10, %v1531_v0, %v1526_v4  ;;  %v1060_v45 = vpop.xlane.xlu1 %1059 }
 0x199   : > { %v1009_v46 = vpop.xlane.xlu0 %1008  ;;  %v1784_v41 = vrot.slane %v1060_v45, %v3495_v16 }
 0x19a   : > { %v1700_v42 = vrot.slane %v1009_v46, %v1530_v6 }
 0x19b   : > { %v3508_v49 = vsel %vm1539_vm11, %v1784_v41, %v1780_v51 }
 0x19c   : > { %v3511_v50 = vsel %vm1532_vm10, %v1700_v42, %v1696_v20  ;;  %v1156_v36 = vpop.xlane.xlu1 %1155 }
 0x19d   : > { %v1105_v35 = vpop.xlane.xlu0 %1104  ;;  %v1942_v32 = vrot.slane %v1156_v36, %v3495_v16 }
 0x19e   : > { %v1858_v52 = vrot.slane %v1105_v35, %v1530_v6 }
 0x19f   : > { %v1943_v0 = vsel %vm1539_vm11, %v1942_v32, %v3491_v30 }
 0x1a0   : > { %v3514_v48 = vsel %vm1532_vm10, %v1858_v52, %v1854_v31  ;;  %v3516_v47 = vpop.xlane.xlu1 %1251 }
 0x1a1   : > { %v1201_v55 = vpop.xlane.xlu0 %1200  ;;  %v2100_v45 = vrot.slane %v3516_v47, %v3495_v16 }
 0x1a2   : > { %v2016_v23 = vrot.slane %v1201_v55, %v1530_v6 }
 0x1a4   : > { %v3519_v58 = vsel %vm1532_vm10, %v2016_v23, %v2012_v37  ;;  %v967_v60 = vpop.xlane.xlu1 %966 }
 0x1a5   : > { %v916_v56 = vpop.xlane.xlu0 %915  ;;  %v1631_v26 = vrot.slane %v967_v60, %v3563_v22 }
 0x1a6   : > { %v1538_v61 = vrot.slane %v916_v56, %v3495_v16 }
 0x1a7   : > { %v1632_v46 = vsel %vm1546_vm12, %v1631_v26, %v3503_v43 }
 0x1a8   : > { %v3523_v59 = vsel %vm1539_vm11, %v1538_v61, %v1533_v44  ;;  %v3525_v62 = vpop.xlane.xlu1 %1062 }
 0x1a9   : > { %v3527_v24 = vpop.xlane.xlu0 %1011  ;;  %v1789_v41 = vrot.slane %v3525_v62, %v3563_v22 }
 0x1aa   : > { %v1705_v36 = vrot.slane %v3527_v24, %v3495_v16 }
 0x1ac   : > { %v1159_v54 = vpop.xlane.xlu1 %1158 }
 0x1ad   : > { %v3529_v11 = vpop.xlane.xlu0 %1107  ;;  %v1947_v37 = vrot.slane %v1159_v54, %v3563_v22 }
 0x1af   : > { %v1948_v30 = vsel %vm1546_vm12, %v1947_v37, %v1943_v0 }
 0x1b0   : > { %v3531_v33 = vpop.xlane.xlu1 %1254 }
 0x1b1   : > { %v3533_v63 = vpop.xlane.xlu0 %1203  ;;  %v2105_v35 = vrot.slane %v3531_v33, %v3563_v22  ;;  %v2101_v33 = vsel %vm1539_vm11, %v2100_v45, %v3498_v17 }
 0x1b2   : > { %v2021_v17 = vrot.slane %v3533_v63, %v3495_v16 }
 0x1b4   : > { %v970_v57 = vpop.xlane.xlu1 %969  ;;  %v2022_v0 = vsel %vm1539_vm11, %v2021_v17, %v3519_v58 }
 0x1b5   : > { %v3535_v1 = vpop.xlane.xlu0 %918  ;;  %v1636_v12 = vrot.slane %v970_v57, %v3567_v28 }
 0x1b7   : > { %v1637_v52 = vsel %vm1553_vm13, %v1636_v12, %v1632_v46 }
 0x1b8   : > { %v3537_v2 = vpop.xlane.xlu1 %1065 }
 0x1b9   : > { %v3539_v6 = vpop.xlane.xlu0 %1014  ;;  %v1794_v43 = vrot.slane %v3537_v2, %v3567_v28 }
 0x1bc   : > { %v1162_v9 = vpop.xlane.xlu1 %1161 }
 0x1bd   : > { %v3541_v10 = vpop.xlane.xlu0 %1110  ;;  %v1952_v40 = vrot.slane %v1162_v9, %v3567_v28 }
 0x1be   : > { %v1868_v63 = vrot.slane %v3541_v10, %v3563_v22 }
 0x1bf   : > { %v1953_v23 = vsel %vm1553_vm13, %v1952_v40, %v1948_v30 }
 0x1c0   : > { %v3543_v3 = vpop.xlane.xlu1 %1257 }
 0x1c1   : > { %v3545_v13 = vpop.xlane.xlu0 %1206  ;;  %v2110_v60 = vrot.slane %v3543_v3, %v3567_v28  ;;  %v1790_v3 = vsel %vm1546_vm12, %v1789_v41, %v3508_v49  ;;  %v1706_v49 = vsel %vm1539_vm11, %v1705_v36, %v3511_v50 }
 0x1c2   : > { %v2026_v50 = vrot.slane %v3545_v13, %v3563_v22 }
 0x1c4   : > { %v973_v14 = vpop.xlane.xlu1 %972 }
 0x1c5   : > { %v3547_v18 = vpop.xlane.xlu0 %921  ;;  %v1641_v44 = vrot.slane %v973_v14, %v3573_v34  ;;  %v1863_v14 = vrot.slane %v3529_v11, %v3495_v16  ;;  %v1545_v11 = vrot.slane %v3535_v1, %v3563_v22  ;;  %v1710_v16 = vrot.slane %v3539_v6, %v3563_v22 }
 0x1c6   : > { %v1552_v1 = vrot.slane %v3547_v18, %v3567_v28 }
 0x1c7   : > { %v1642_v24 = vsel %vm1560_vm14, %v1641_v44, %v1637_v52  ;;  %v1864_v10 = vsel %vm1539_vm11, %v1863_v14, %v3514_v48  ;;  %v1547_v58 = vsel %vm1546_vm12, %v1545_v11, %v3523_v59 }
 0x1c8   : > { %v3549_v7 = vpop.xlane.xlu1 %1068 }
 0x1c9   : > { %v3551_v4 = vpop.xlane.xlu0 %1017  ;;  %v1799_v61 = vrot.slane %v3549_v7, %v3573_v34  ;;  %v2106_v7 = vsel %vm1546_vm12, %v2105_v35, %v2101_v33 }
 0x1ca   : > { %v2111_v21 = vsel %vm1553_vm13, %v2110_v60, %v2106_v7  ;;  %v1715_v12 = vrot.slane %v3551_v4, %v3567_v28 }
 0x1cc   : > { %v1165_v8 = vpop.xlane.xlu1 %1164 }
 0x1cd   : > { %v3553_v5 = vpop.xlane.xlu0 %1113  ;;  %v1957_v15 = vrot.slane %v1165_v8, %v3573_v34 }
 0x1ce   : > { %v1873_v44 = vrot.slane %v3553_v5, %v3567_v28  ;;  %v1711_v5 = vsel %vm1546_vm12, %v1710_v16, %v1706_v49 }
 0x1cf   : > { %v1958_v54 = vsel %vm1560_vm14, %v1957_v15, %v1953_v23  ;;  %v1716_v45 = vsel %vm1553_vm13, %v1715_v12, %v1711_v5 }
 0x1d0   : > { %v3557_v51 = vpop.xlane.xlu1 %1260 }
 0x1d1   : > { %v3559_v20 = vpop.xlane.xlu0 %1209  ;;  %v2115_v62 = vrot.slane %v3557_v51, %v3573_v34  ;;  %v1795_v51 = vsel %vm1553_vm13, %v1794_v43, %v1790_v3 }
 0x1d2   : > { %v2031_v13 = vrot.slane %v3559_v20, %v3567_v28  ;;  %v1869_v28 = vsel %vm1546_vm12, %v1868_v63, %v1864_v10 }
 0x1d3   : > { %v2116_v32 = vsel %vm1560_vm14, %v2115_v62, %v2111_v21 }
 0x1d4   : > { %v976_v29 = vpop.xlane.xlu1 %975 }
 0x1d5   : > { %v3569_v31 = vpop.xlane.xlu0 %924  ;;  %v1646_v42 = vrot.slane %v976_v29, %v3577_v27  ;;  %v1800_v29 = vsel %vm1560_vm14, %v1799_v61, %v1795_v51 }
 0x1d6   : > { %v1559_v18 = vrot.slane %v3569_v31, %v3573_v34  ;;  %v2027_v31 = vsel %vm1546_vm12, %v2026_v50, %v2022_v0 }
 0x1d7   : > { %v1647_v2 = vsel %vm1567_vm15, %v1646_v42, %v1642_v24  ;;  %v2032_v59 = vsel %vm1553_vm13, %v2031_v13, %v2027_v31 }
 0x1d8   : > { %v1072_v38 = vpop.xlane.xlu1 %1071 }
 0x1d9   : > { %v3581_v39 = vpop.xlane.xlu0 %1020  ;;  %v1804_v57 = vrot.slane %v1072_v38, %v3577_v27 }
 0x1da   : > { %v1720_v4 = vrot.slane %v3581_v39, %v3573_v34  ;;  %v1554_v39 = vsel %vm1553_vm13, %v1552_v1, %v1547_v58 }
 0x1db   : > { %v1805_v26 = vsel %vm1567_vm15, %v1804_v57, %v1800_v29  ;;  %v1561_v30 = vsel %vm1560_vm14, %v1559_v18, %v1554_v39 }
 0x1dc   : > { %v1168_v55 = vpop.xlane.xlu1 %1167  ;;  %v1721_v35 = vsel %vm1560_vm14, %v1720_v4, %v1716_v45 }
 0x1dd   : > { %v3601_v47 = vpop.xlane.xlu0 %1116  ;;  %v1962_v56 = vrot.slane %v1168_v55, %v3577_v27 }
 0x1de   : > { %v1878_v22 = vrot.slane %v3601_v47, %v3573_v34 }
 0x1df   : > { %v1963_v9 = vsel %vm1567_vm15, %v1962_v56, %v1958_v54 }
 0x1e0   : > { %v1264_v8 = vpop.xlane.xlu1 %1263  ;;  %v2124_v53 = vsel %vm2122_vm0, %v1963_v9, %v1647_v2  ;;  %v1265_v2 = vld [vmem:[#allocation2] sm:$0x3] }
 0x1e1   : > { %v1213_v19 = vpop.xlane.xlu0 %1212  ;;  %v2120_v25 = vrot.slane %v1264_v8, %v3577_v27  ;;  %2195 = vmatprep.mubr.f32.mxu0 %v2124_v53 }
 0x1e2   : > { %v2036_v48 = vrot.slane %v1213_v19, %v3573_v34  ;;  %v1874_v34 = vsel %vm1553_vm13, %v1873_v44, %v1869_v28 }
 0x1e3   : > { %v2121_v37 = vsel %vm1567_vm15, %v2120_v25, %v2116_v32  ;;  %v1879_v52 = vsel %vm1560_vm14, %v1878_v22, %v1874_v34 }
 0x1e4   : > { %v1024_v38 = vpop.xlane.xlu1 %1023  ;;  %v2126_v6 = vsel %vm2122_vm0, %v2121_v37, %v1805_v26  ;;  %v2037_v55 = vsel %vm1560_vm14, %v2036_v48, %v2032_v59 }
 0x1e5   : > { %v928_v40 = vpop.xlane.xlu0 %927  ;;  %2265 = vmatprep.mubr.f32.mxu1 %v2126_v6  ;;  %v1725_v15 = vrot.slane %v1024_v38, %v3577_v27 }
 0x1e6   : > { %v1566_v20 = vrot.slane %v928_v40, %v3577_v27 }
 0x1e7   : > { %v1726_v23 = vsel %vm1567_vm15, %v1725_v15, %v1721_v35 }
 0x1e8   : > { %v1216_v46 = vpop.xlane.xlu1 %1215  ;;  %v1568_v47 = vsel %vm1567_vm15, %v1566_v20, %v1561_v30 }
 0x1e9   : > { %v1120_v41 = vpop.xlane.xlu0 %1119  ;;  %v2041_v42 = vrot.slane %v1216_v46, %v3577_v27 }
 0x1ea   : > { %v1883_v36 = vrot.slane %v1120_v41, %v3577_v27 }
 0x1eb   : > { %v2042_v60 = vsel %vm1567_vm15, %v2041_v42, %v2037_v55 }
 0x1ec   : > { %v1884_v43 = vsel %vm1567_vm15, %v1883_v36, %v1879_v52  ;;  %v2125_v27 = vsel %vm2122_vm0, %v2042_v60, %v1726_v23 }
 0x1ed   : > { %v2123_v56 = vsel %vm2122_vm0, %v1884_v43, %v1568_v47  ;;  %2266 = vmatmul.mubr.f32.vlgmr.msra.gmra.mxu1 %v2125_v27 }
 0x1ee   : > { %2196 = vmatmul.mubr.f32.vlgmr.msra.gmra.mxu0 %v2123_v56 }
 0x2ad   : > { %v2452_v62 = vpop.f32.mrf.mxu1 }
 0x2ae   : > { %v2417_v61 = vpop.f32.mrf.mxu0 }
 0x2af   : > { %v2453_v54 = vpop.f32.mrf.mxu1 }
 0x2b0   : > { %v2418_v24 = vpop.f32.mrf.mxu0  ;;  %v2454_v57 = vadd.f32 %v2453_v54, %v2452_v62 }
 0x2b1   : > { %v2419_v33 = vadd.f32 %v2418_v24, %v2417_v61 }
 0x2b3   : > { %v2268_v9 = vadd.f32 %v2454_v57, %v2419_v33  ;;  %2276 = sbr.rel (%p2378_p11) target bundleno = 706 (0x2c2), region = 78 }
 0x2b5   : > { %v2271_v3 = vadd.f32 %v2268_v9, %v1265_v2 }
 0x2b7   : > { %2272 = vst [vmem:[#allocation2] sm:$0x3] %v2271_v3 }
 0x2b8   : > { %v2379_v7 = vld [vmem:[%s3726_s2] ss:$0 sm:$0xff] }
 0x2be   : > { %v2277_v14 = vld [vmem:[#allocation2] sm:$0x3] }
 0x2bf   : > { %v2285_v8 = vadd.f32 %v2379_v7, %v2277_v14 }
 0x2c1   : > { %2286 = vst [vmem:[#allocation4] sm:$0x3] %v2285_v8 }
 0x2c2 PF: > { %p3694_p12 = scmp.eq.s32.totalorder %s2367_s17, 3  ;;  %s2572_s19 = smov [#allocation4]  }
 0x2c3   : > { %s2296_s20 = sshll.u32 %s2572_s19, 4  ;;  %s2297_s20 = int_to_ptr.vmem [resolvable:$true] %s2296_s20 }
 0x2c4   : > { %s2503_s14 = scalar_lea.vmem %s2297_s20, 32  ;;  %p2510_p2 = scmp.lt.s32.totalorder %s2297_s20, %s2297_s20 }
 0x2c5   : > { %p2504_p13 = scmp.ne.s32.totalorder %s2297_s20, %s2503_s14  ;;  %p2511_p3 = scmp.lt.s32.totalorder %s2503_s14, %s2503_s14 }
 0x2c7   : > { %p2505_p0 = pnand %p2504_p13, %p3694_p12  ;;  %p2512_p4 = por %p2511_p3, %p2510_p2 }
 0x2c9   : > { %p2506_p1 = pneg %p2505_p0 }
 0x2cb   : > { %p2513_p5 = pnand %p2512_p4, %p2506_p1 }
 0x2cd   : > { %2516 = shalt.err (!%p2513_p5)
}
 0x2ce   : > { %2456 = dma.vmem_to_hbm [thread:$0]  (%p3694_p12), %s2297_s20, 32, %s3727_s3, [#allocation5]  }
 0x2cf   : > { %2548 = dma.done.wait (%p3694_p12), [#allocation5], 32  }
 0x2d0   : > { %2550 = vsyncadd (%p3694_p12), [#allocation5], 4294967264 }
 0x2d1 PF: > { %s14_s16 = sadd.s32 1, %s2569_s16   ;;  %s3729_s12 = smov %s2557_s13 }
 0x2d2   : > { %p11_p6 = scmp.ge.s32.totalorder %s14_s16, 6   ;;  %s3730_s13 = smov %s2629_s21 }
 0x2d3   : > { %s3731_s14 = smov %s2565_s15  ;;  %s3732_s15 = smov %s3734_s18 }
 0x2d4   :  { %13 = sbr.rel (!%p11_p6) target bundleno = 3 (0x3), region = 114 }
 0x2d9   :  { %2309 = vsyncpa [#allocation5], 1 }
 0x2da   :  { %2311 = vsyncpa [#allocation5 + $0x1], 1 }

</bundles_post_ra>
